<compile_context>
chip_gen: v7x
topology: tpu7x:2x2x1
jax: 0.10.0
libtpu: 0.0.40
codegen_flags: <defaults>
</compile_context>

<pallas_src>
import functools

import jax
import jax.numpy as jnp
from jax import lax
from jax.experimental import pallas as pl
from jax.experimental.pallas import tpu as pltpu

B = 2           # batch
T = 8           # sequence length
D_MODEL = 32    # model dim (256 in the original)
D_HIDDEN = 32   # variance-predictor hidden dim (256 in the original)
NUM_BINS = 16   # pitch/energy bins (256 in the original)
MAX_MEL = 128   # static mel-length cap (PyTorch syncs .item(); see TODO below)
MEL_TILE = 64   # length-regulator output row tile


# --------------------------------------------------------------------------
# Fused kernel: pitch VP + energy VP + embed/add + duration VP (+ postproc).
# Grid = (B,): one sequence per step; conv taps never cross a tile boundary.
# --------------------------------------------------------------------------
def _fused_kernel(nbins,
                  lens_ref,                                   # SMEM prefetch (B,)
                  x_ref,                                      # (T, D) f32 tile
                  w1pe_ref, b1pe_ref, w1d_ref, b1d_ref,
                  g1_ref, be1_ref,
                  w2_ref, b2_ref, g2_ref, be2_ref,
                  w3_ref, b3_ref,
                  bins_ref, emb_ref,
                  x2_ref, preds_ref, tot_ref):
    t_len, _ = x_ref.shape
    h_dim = w1d_ref.shape[1]
    b = pl.program_id(0)
    x = x_ref[...]

    # Padding / conv-edge masks: O(1) iota arithmetic, one SMEM scalar read.
    pos = lax.broadcasted_iota(jnp.int32, (t_len, 1), 0)
    pad = pos >= lens_ref[b]
    valid_prev = pos >= 1
    valid_next = pos <= t_len - 2

    def hcat3(h):
        # Conv1d(k=3, padding=1) LHS: [h[t-1] | h[t] | h[t+1]] with zero edges,
        # cast to bf16 once for the MXU.
        h_prev = jnp.where(valid_prev, pltpu.roll(h, 1, 0), 0.0)
        h_next = jnp.where(valid_next, pltpu.roll(h, t_len - 1, 0), 0.0)
        return jnp.concatenate([h_prev, h, h_next], axis=1).astype(jnp.bfloat16)

    def layer_norm(h, g, be):
        mu = jnp.mean(h, axis=-1, keepdims=True)
        var = jnp.mean((h - mu) ** 2, axis=-1, keepdims=True)
        return (h - mu) * lax.rsqrt(var + 1e-5) * g + be

    def vp_tail(h1, p):
        # h1: (T, H) layer-1 output post-ReLU; p in {0: pitch, 1: energy, 2: duration}.
        h = layer_norm(h1, g1_ref[p], be1_ref[p])
        # nn.Dropout: identity in eval mode (deterministic forward).
        h = jnp.dot(hcat3(h), w2_ref[p], preferred_element_type=jnp.float32) + b2_ref[p]
        h = layer_norm(jnp.maximum(h, 0.0), g2_ref[p], be2_ref[p])
        # Linear(H, 1) as VPU multiply + lane reduce (avoids an N=1 MXU pass).
        out = jnp.sum(h * w3_ref[p], axis=-1, keepdims=True) + b3_ref[p]    # (T, 1)
        return jnp.where(pad, 0.0, out)                                     # masked_fill

    # ---- pitch + energy share the layer-1 hcat: one (T,3C)@(3C,2H) matmul ----
    h_pe = jnp.dot(hcat3(x), w1pe_ref[...], preferred_element_type=jnp.float32)
    h_pe = jnp.maximum(h_pe + b1pe_ref[...], 0.0)                           # (T, 2H)
    pitch = vp_tail(h_pe[:, :h_dim], 0)
    energy = vp_tail(h_pe[:, h_dim:], 1)

    # ---- bucketize + merged pitch/energy embedding lookup + residual add ----
    bins = bins_ref[...]                                                    # (2, NB-1)
    # torch.bucketize(v, bins) (right=False) == count(bins < v)
    idx_p = jnp.sum((pitch > bins[0:1, :]).astype(jnp.int32), axis=1, keepdims=True)
    idx_e = jnp.sum((energy > bins[1:2, :]).astype(jnp.int32), axis=1, keepdims=True)
    col = lax.broadcasted_iota(jnp.int32, (t_len, 2 * nbins), 1)
    onehot = ((col == idx_p) | (col == idx_e + nbins)).astype(jnp.bfloat16)
    emb = jnp.dot(onehot, emb_ref[...], preferred_element_type=jnp.float32)  # (T, D)
    x2 = x + emb
    x2_ref[...] = x2

    # ---- duration predictor on x2 + post-processing epilogue ----
    h_d = jnp.dot(hcat3(x2), w1d_ref[...], preferred_element_type=jnp.float32)
    raw_dur = vp_tail(jnp.maximum(h_d + b1d_ref[...], 0.0), 2)              # (T, 1)
    dur = jnp.maximum(jnp.round(jnp.exp(raw_dur) - 1.0), 0.0)               # clamp(round(exp-1),0)

    # Lane-dense packed scalar outputs: rows 0..3 = pitch/energy/raw_dur/dur.
    preds_4t = jnp.concatenate([pitch, energy, raw_dur, dur], axis=1).T     # (4, T)
    preds_ref[0] = preds_4t
    # Per-batch duration total (lane reduce of the lane-dense dur row).
    tot_ref[0] = jnp.sum(preds_4t[3:4, :], axis=1, keepdims=True)           # (1, 1)


def _fused_call(lengths, x_flat, p, nbatch, t_len):
    n_rows, d_model = x_flat.shape
    nbins = p["emb"].shape[0] // 2
    kern = functools.partial(_fused_kernel, nbins)

    def wspec(a):
        zeros = (0,) * a.ndim
        return pl.BlockSpec(a.shape, lambda b, lens, _z=zeros: _z)   # VMEM-resident

    weights = (p["w1_pe"], p["b1_pe"], p["w1_d"], p["b1_d"],
               p["g1"], p["be1"], p["w2"], p["b2"], p["g2"], p["be2"],
               p["w3"], p["b3"], p["bins"], p["emb"])

    grid_spec = pltpu.PrefetchScalarGridSpec(
        num_scalar_prefetch=1,                    # `lengths` -> SMEM
        grid=(nbatch,),                           # one sequence per grid step
        in_specs=[pl.BlockSpec((t_len, d_model), lambda b, lens: (b, 0))]
                 + [wspec(w) for w in weights],
        out_specs=[
            pl.BlockSpec((t_len, d_model), lambda b, lens: (b, 0)),          # x2
            pl.BlockSpec((1, 4, t_len), lambda b, lens: (b, 0, 0)),          # preds
            pl.BlockSpec((1, 1, 1), lambda b, lens: (b, 0, 0)),              # totals
        ],
    )
    return pl.pallas_call(
        kern,
        out_shape=(jax.ShapeDtypeStruct((n_rows, d_model), jnp.float32),
                   jax.ShapeDtypeStruct((nbatch, 4, t_len), jnp.float32),
                   jax.ShapeDtypeStruct((nbatch, 1, 1), jnp.float32)),
        grid_spec=grid_spec,
        compiler_params=pltpu.CompilerParams(dimension_semantics=("parallel",)),
    )(lengths, x_flat, *weights)


# --------------------------------------------------------------------------
# Length regulator: device-side repeat_interleave, tiled over mel blocks.
# Duration cumsums are precomputed in XLA and fed as tiny (B,1,T) operands.
# --------------------------------------------------------------------------
def _lr_kernel(starts_ref, ends_ref, x_ref, o_ref):
    _, t_len, _ = x_ref.shape
    mel_tile = o_ref.shape[1]
    m0 = pl.program_id(1) * mel_tile
    m = (m0 + lax.broadcasted_iota(jnp.int32, (mel_tile, t_len), 0)).astype(jnp.float32)
    onehot = ((m >= starts_ref[0]) & (m < ends_ref[0])).astype(jnp.float32)
    # TODO(synk): a bf16 hi/lo split (or a sublane jnp.take gather) would cut the
    # f32 MXU cost here but loses the bit-exact repeat_interleave copy; kept f32
    # exact and bounded the one-hot temp via mel tiling instead.
    o_ref[0] = jnp.dot(onehot, x_ref[0], preferred_element_type=jnp.float32)


def length_regulator(x2, starts, ends, max_mel, mel_tile=MEL_TILE):
    bsz, t_len, d_model = x2.shape
    mel_tile = min(mel_tile, max_mel)
    assert max_mel % mel_tile == 0
    starts3 = starts.reshape(bsz, 1, t_len)
    ends3 = ends.reshape(bsz, 1, t_len)
    return pl.pallas_call(
        _lr_kernel,
        out_shape=jax.ShapeDtypeStruct((bsz, max_mel, d_model), jnp.float32),
        grid=(bsz, max_mel // mel_tile),
        in_specs=[pl.BlockSpec((1, 1, t_len), lambda b, m: (b, 0, 0)),
                  pl.BlockSpec((1, 1, t_len), lambda b, m: (b, 0, 0)),
                  pl.BlockSpec((1, t_len, d_model), lambda b, m: (b, 0, 0))],
        out_specs=pl.BlockSpec((1, mel_tile, d_model), lambda b, m: (b, m, 0)),
        compiler_params=pltpu.CompilerParams(
            dimension_semantics=("parallel", "parallel")),
    )(starts3, ends3, x2)


# --------------------------------------------------------------------------
# Full VarianceAdaptor forward (inference path, ground_truth=None)
# --------------------------------------------------------------------------
def variance_adaptor_forward(x, lengths, params, max_mel=MAX_MEL):
    # x: (B, T, D) f32; lengths: (B,) int32 valid lengths
    # (equivalent to PyTorch's input_mask = arange(T) >= length, True == padded)
    bsz, t_len, d_model = x.shape
    x_flat = x.reshape(bsz * t_len, d_model)

    x2_flat, preds, totals = _fused_call(lengths, x_flat, params, bsz, t_len)

    pitch_pred = preds[:, 0, :]
    energy_pred = preds[:, 1, :]
    raw_dur = preds[:, 2, :]
    dur_f = preds[:, 3, :]                      # integer-valued f32 durations
    totals = totals[:, 0, 0]
    x2 = x2_flat.reshape(bsz, t_len, d_model)

    # Static mel cap: no device->host sync, no per-length recompiles; jit-safe.
    # TODO(synk): PyTorch sizes the mel axis to int(max(sum(durations)).item());
    # here we pad to a static MAX_MEL and rely on output_masks (frames past the
    # cap would be dropped if a total ever exceeded it).
    ends = jnp.cumsum(dur_f, axis=1)            # inclusive cumsum (exact in f32)
    starts = ends - dur_f                       # exclusive cumsum
    output = length_regulator(x2, starts, ends, max_mel)
    output_masks = jnp.arange(max_mel)[None, :] >= totals[:, None]
    return output, pitch_pred, energy_pred, raw_dur, output_masks


# --------------------------------------------------------------------------
# Deterministic parameter init (shapes from the module __init__).
# Stacked weights use index 0=pitch, 1=energy, 2=duration.  Conv weights are
# stored pre-concatenated over taps (3*C_in, H); pitch & energy layer-1
# weights are additionally concatenated on the output axis (shared hcat).
# --------------------------------------------------------------------------
def init_params(key, d_model, d_hidden, num_bins):
    ks = jax.random.split(key, 4)
    s = 0.1
    w1 = jax.random.normal(ks[0], (3, 3 * d_model, d_hidden), jnp.float32) * s
    params = {
        "w1_pe": jnp.concatenate([w1[0], w1[1]], axis=1).astype(jnp.bfloat16),  # (3D, 2H)
        "b1_pe": jnp.zeros((1, 2 * d_hidden), jnp.float32),
        "w1_d": w1[2].astype(jnp.bfloat16),                                     # (3D, H)
        "b1_d": jnp.zeros((1, d_hidden), jnp.float32),
        "g1": jnp.ones((3, 1, d_hidden), jnp.float32),
        "be1": jnp.zeros((3, 1, d_hidden), jnp.float32),
        "w2": (jax.random.normal(ks[1], (3, 3 * d_hidden, d_hidden), jnp.float32) * s
               ).astype(jnp.bfloat16),
        "b2": jnp.zeros((3, 1, d_hidden), jnp.float32),
        "g2": jnp.ones((3, 1, d_hidden), jnp.float32),
        "be2": jnp.zeros((3, 1, d_hidden), jnp.float32),
        "w3": jax.random.normal(ks[2], (3, 1, d_hidden), jnp.float32) * s,
        # Bias the duration head so predicted durations are > 0 in the demo.
        "b3": jnp.zeros((3, 1, 1), jnp.float32).at[2].set(1.0),
        # rows: 0 = pitch bins, 1 = energy bins
        "bins": jnp.stack([
            jnp.linspace(-2.917079304729967, 11.391254536985784,
                         num_bins - 1, dtype=jnp.float32),
            jnp.linspace(-1.431044578552246, 8.184337615966797,
                         num_bins - 1, dtype=jnp.float32)], axis=0),
        # rows [0, NB) = pitch embedding table, [NB, 2*NB) = energy embedding table
        "emb": (jax.random.normal(ks[3], (2 * num_bins, d_model), jnp.float32) * 0.1
                ).astype(jnp.bfloat16),
    }
    return params


if __name__ == "__main__":
    key = jax.random.PRNGKey(0)
    k_x, k_p = jax.random.split(key)

    x = jax.random.normal(k_x, (B, T, D_MODEL), jnp.float32)
    lengths = jnp.array([T, T - 2], jnp.int32)   # second sequence has 2 padded frames
    params = init_params(k_p, D_MODEL, D_HIDDEN, NUM_BINS)

    fwd = jax.jit(variance_adaptor_forward, static_argnames=("max_mel",))
    out, pitch_p, energy_p, raw_dur, out_masks = fwd(x, lengths, params,
                                                     max_mel=MAX_MEL)
    jax.block_until_ready((out, pitch_p, energy_p, raw_dur, out_masks))
    print("KERNEL_OK")
</pallas_src>

<mosaic_0001>
module attributes {stable_mosaic.version = 11 : i64} {
  func.func @_fused_kernel(%arg0: i32, %arg1: memref<2xi32, #tpu.memory_space<smem>>, %arg2: memref<8x32xf32, #tpu.memory_space<vmem>>, %arg3: memref<96x64xbf16, #tpu.memory_space<vmem>>, %arg4: memref<1x64xf32, #tpu.memory_space<vmem>>, %arg5: memref<96x32xbf16, #tpu.memory_space<vmem>>, %arg6: memref<1x32xf32, #tpu.memory_space<vmem>>, %arg7: memref<3x1x32xf32, #tpu.memory_space<vmem>>, %arg8: memref<3x1x32xf32, #tpu.memory_space<vmem>>, %arg9: memref<3x96x32xbf16, #tpu.memory_space<vmem>>, %arg10: memref<3x1x32xf32, #tpu.memory_space<vmem>>, %arg11: memref<3x1x32xf32, #tpu.memory_space<vmem>>, %arg12: memref<3x1x32xf32, #tpu.memory_space<vmem>>, %arg13: memref<3x1x32xf32, #tpu.memory_space<vmem>>, %arg14: memref<3x1x1xf32, #tpu.memory_space<vmem>>, %arg15: memref<2x15xf32, #tpu.memory_space<vmem>>, %arg16: memref<32x32xbf16, #tpu.memory_space<vmem>>, %arg17: memref<8x32xf32, #tpu.memory_space<vmem>>, %arg18: memref<1x4x8xf32, #tpu.memory_space<vmem>>, %arg19: memref<1x1x1xf32, #tpu.memory_space<vmem>>) attributes {dimension_semantics = [#tpu.dimension_semantics<parallel>], iteration_bounds = array<i64: 2>, scalar_prefetch = 1 : i64, scratch_operands = 0 : i64, tpu.core_type = #tpu.core_type<tc>, window_params = [{transform_indices = @transform_0, window_bounds = array<i64: 8, 32>}, {pipeline_mode = #tpu.pipeline_mode<synchronous>, transform_indices = @transform_1, window_bounds = array<i64: 96, 64>}, {pipeline_mode = #tpu.pipeline_mode<synchronous>, transform_indices = @transform_2, window_bounds = array<i64: 1, 64>}, {pipeline_mode = #tpu.pipeline_mode<synchronous>, transform_indices = @transform_3, window_bounds = array<i64: 96, 32>}, {pipeline_mode = #tpu.pipeline_mode<synchronous>, transform_indices = @transform_4, window_bounds = array<i64: 1, 32>}, {pipeline_mode = #tpu.pipeline_mode<synchronous>, transform_indices = @transform_5, window_bounds = array<i64: 3, 1, 32>}, {pipeline_mode = #tpu.pipeline_mode<synchronous>, transform_indices = @transform_6, window_bounds = array<i64: 3, 1, 32>}, {pipeline_mode = #tpu.pipeline_mode<synchronous>, transform_indices = @transform_7, window_bounds = array<i64: 3, 96, 32>}, {pipeline_mode = #tpu.pipeline_mode<synchronous>, transform_indices = @transform_8, window_bounds = array<i64: 3, 1, 32>}, {pipeline_mode = #tpu.pipeline_mode<synchronous>, transform_indices = @transform_9, window_bounds = array<i64: 3, 1, 32>}, {pipeline_mode = #tpu.pipeline_mode<synchronous>, transform_indices = @transform_10, window_bounds = array<i64: 3, 1, 32>}, {pipeline_mode = #tpu.pipeline_mode<synchronous>, transform_indices = @transform_11, window_bounds = array<i64: 3, 1, 32>}, {pipeline_mode = #tpu.pipeline_mode<synchronous>, transform_indices = @transform_12, window_bounds = array<i64: 3, 1, 1>}, {pipeline_mode = #tpu.pipeline_mode<synchronous>, transform_indices = @transform_13, window_bounds = array<i64: 2, 15>}, {pipeline_mode = #tpu.pipeline_mode<synchronous>, transform_indices = @transform_14, window_bounds = array<i64: 32, 32>}, {transform_indices = @transform_15, window_bounds = array<i64: 8, 32>}, {transform_indices = @transform_16, window_bounds = array<i64: 1, 4, 8>}, {transform_indices = @transform_17, window_bounds = array<i64: 1, 1, 1>}]} {
    %c0 = arith.constant 0 : index
    %c0_0 = arith.constant 0 : index
    %0 = vector.load %arg2[%c0, %c0_0] : memref<8x32xf32, #tpu.memory_space<vmem>>, vector<8x32xf32>
    %1 = tpu.iota {dimensions = array<i32: 0>} : vector<8x1xi32>
    %2 = arith.index_cast %arg0 : i32 to index
    %3 = memref.load %arg1[%2] : memref<2xi32, #tpu.memory_space<smem>>
    %4 = vector.broadcast %3 : i32 to vector<8x1xi32>
    %5 = arith.cmpi sge, %1, %4 : vector<8x1xi32>
    %c1_i32 = arith.constant 1 : i32
    %6 = vector.broadcast %c1_i32 : i32 to vector<8x1xi32>
    %7 = arith.cmpi sge, %1, %6 : vector<8x1xi32>
    %c6_i32 = arith.constant 6 : i32
    %8 = vector.broadcast %c6_i32 : i32 to vector<8x1xi32>
    %9 = arith.cmpi sle, %1, %8 : vector<8x1xi32>
    %c1_i32_1 = arith.constant 1 : i32
    %10 = tpu.dynamic_rotate %0 by %c1_i32_1 dim 0 : vector<8x32xf32>, i32 -> vector<8x32xf32>
    %cst = arith.constant 0.000000e+00 : f32
    %11 = vector.shape_cast %7 : vector<8x1xi1> to vector<8x1xi1>
    %12 = vector.broadcast %11 : vector<8x1xi1> to vector<8x32xi1>
    %13 = vector.broadcast %cst : f32 to vector<8x32xf32>
    %14 = arith.select %12, %10, %13 : vector<8x32xi1>, vector<8x32xf32>
    %c7_i32 = arith.constant 7 : i32
    %15 = tpu.dynamic_rotate %0 by %c7_i32 dim 0 : vector<8x32xf32>, i32 -> vector<8x32xf32>
    %cst_2 = arith.constant 0.000000e+00 : f32
    %16 = vector.shape_cast %9 : vector<8x1xi1> to vector<8x1xi1>
    %17 = vector.broadcast %16 : vector<8x1xi1> to vector<8x32xi1>
    %18 = vector.broadcast %cst_2 : f32 to vector<8x32xf32>
    %19 = arith.select %17, %15, %18 : vector<8x32xi1>, vector<8x32xf32>
    %20 = tpu.concatenate %14, %0, %19 in 1 : vector<8x32xf32>, vector<8x32xf32>, vector<8x32xf32> -> vector<8x96xf32>
    %21 = arith.truncf %20 : vector<8x96xf32> to vector<8x96xbf16>
    %c0_3 = arith.constant 0 : index
    %c0_4 = arith.constant 0 : index
    %22 = vector.load %arg3[%c0_3, %c0_4] : memref<96x64xbf16, #tpu.memory_space<vmem>>, vector<96x64xbf16>
    %cst_5 = arith.constant dense<0.000000e+00> : vector<8x64xf32>
    %23 = tpu.matmul %21, %22, %cst_5 {dimension_numbers = #tpu.dot_dimension_numbers<[1], [0], [0], [1], [0, 0, 1, 1], [], []>} : vector<8x96xbf16>, vector<96x64xbf16>, vector<8x64xf32> -> vector<8x64xf32>
    %c0_6 = arith.constant 0 : index
    %c0_7 = arith.constant 0 : index
    %24 = vector.load %arg4[%c0_6, %c0_7] : memref<1x64xf32, #tpu.memory_space<vmem>>, vector<1x64xf32>
    %25 = vector.broadcast %24 : vector<1x64xf32> to vector<8x64xf32>
    %26 = arith.addf %23, %25 : vector<8x64xf32>
    %cst_8 = arith.constant 0.000000e+00 : f32
    %27 = vector.broadcast %cst_8 : f32 to vector<8x64xf32>
    %28 = arith.maximumf %26, %27 : vector<8x64xf32>
    %29 = vector.extract_strided_slice %28 {offsets = [0, 0], sizes = [8, 32], strides = [1, 1]} : vector<8x64xf32> to vector<8x32xf32>
    %c0_9 = arith.constant 0 : index
    %c0_10 = arith.constant 0 : index
    %c0_11 = arith.constant 0 : index
    %30 = vector.load %arg7[%c0_9, %c0_10, %c0_11] : memref<3x1x32xf32, #tpu.memory_space<vmem>>, vector<1x1x32xf32>
    %31 = vector.shape_cast %30 : vector<1x1x32xf32> to vector<1x32xf32>
    %c0_12 = arith.constant 0 : index
    %c0_13 = arith.constant 0 : index
    %c0_14 = arith.constant 0 : index
    %32 = vector.load %arg8[%c0_12, %c0_13, %c0_14] : memref<3x1x32xf32, #tpu.memory_space<vmem>>, vector<1x1x32xf32>
    %33 = vector.shape_cast %32 : vector<1x1x32xf32> to vector<1x32xf32>
    %cst_15 = arith.constant dense<0.000000e+00> : vector<8xf32>
    %34 = vector.multi_reduction <add>, %29, %cst_15 [1] : vector<8x32xf32> to vector<8xf32>
    %35 = vector.shape_cast %34 : vector<8xf32> to vector<8x1xf32>
    %cst_16 = arith.constant 3.200000e+01 : f32
    %36 = vector.broadcast %cst_16 : f32 to vector<8x1xf32>
    %37 = arith.divf %35, %36 : vector<8x1xf32>
    %38 = vector.broadcast %37 : vector<8x1xf32> to vector<8x32xf32>
    %39 = arith.subf %29, %38 : vector<8x32xf32>
    %40 = arith.mulf %39, %39 : vector<8x32xf32>
    %cst_17 = arith.constant dense<0.000000e+00> : vector<8xf32>
    %41 = vector.multi_reduction <add>, %40, %cst_17 [1] : vector<8x32xf32> to vector<8xf32>
    %42 = vector.shape_cast %41 : vector<8xf32> to vector<8x1xf32>
    %cst_18 = arith.constant 3.200000e+01 : f32
    %43 = vector.broadcast %cst_18 : f32 to vector<8x1xf32>
    %44 = arith.divf %42, %43 : vector<8x1xf32>
    %45 = vector.broadcast %37 : vector<8x1xf32> to vector<8x32xf32>
    %46 = arith.subf %29, %45 : vector<8x32xf32>
    %cst_19 = arith.constant 9.99999974E-6 : f32
    %47 = vector.broadcast %cst_19 : f32 to vector<8x1xf32>
    %48 = arith.addf %44, %47 : vector<8x1xf32>
    %49 = math.rsqrt %48 : vector<8x1xf32>
    %50 = vector.broadcast %49 : vector<8x1xf32> to vector<8x32xf32>
    %51 = arith.mulf %46, %50 : vector<8x32xf32>
    %52 = vector.broadcast %31 : vector<1x32xf32> to vector<8x32xf32>
    %53 = arith.mulf %51, %52 : vector<8x32xf32>
    %54 = vector.broadcast %33 : vector<1x32xf32> to vector<8x32xf32>
    %55 = arith.addf %53, %54 : vector<8x32xf32>
    %c1_i32_20 = arith.constant 1 : i32
    %56 = tpu.dynamic_rotate %55 by %c1_i32_20 dim 0 : vector<8x32xf32>, i32 -> vector<8x32xf32>
    %cst_21 = arith.constant 0.000000e+00 : f32
    %57 = vector.shape_cast %7 : vector<8x1xi1> to vector<8x1xi1>
    %58 = vector.broadcast %57 : vector<8x1xi1> to vector<8x32xi1>
    %59 = vector.broadcast %cst_21 : f32 to vector<8x32xf32>
    %60 = arith.select %58, %56, %59 : vector<8x32xi1>, vector<8x32xf32>
    %c7_i32_22 = arith.constant 7 : i32
    %61 = tpu.dynamic_rotate %55 by %c7_i32_22 dim 0 : vector<8x32xf32>, i32 -> vector<8x32xf32>
    %cst_23 = arith.constant 0.000000e+00 : f32
    %62 = vector.shape_cast %9 : vector<8x1xi1> to vector<8x1xi1>
    %63 = vector.broadcast %62 : vector<8x1xi1> to vector<8x32xi1>
    %64 = vector.broadcast %cst_23 : f32 to vector<8x32xf32>
    %65 = arith.select %63, %61, %64 : vector<8x32xi1>, vector<8x32xf32>
    %66 = tpu.concatenate %60, %55, %65 in 1 : vector<8x32xf32>, vector<8x32xf32>, vector<8x32xf32> -> vector<8x96xf32>
    %67 = arith.truncf %66 : vector<8x96xf32> to vector<8x96xbf16>
    %c0_24 = arith.constant 0 : index
    %c0_25 = arith.constant 0 : index
    %c0_26 = arith.constant 0 : index
    %68 = vector.load %arg9[%c0_24, %c0_25, %c0_26] : memref<3x96x32xbf16, #tpu.memory_space<vmem>>, vector<1x96x32xbf16>
    %69 = vector.shape_cast %68 : vector<1x96x32xbf16> to vector<96x32xbf16>
    %cst_27 = arith.constant dense<0.000000e+00> : vector<8x32xf32>
    %70 = tpu.matmul %67, %69, %cst_27 {dimension_numbers = #tpu.dot_dimension_numbers<[1], [0], [0], [1], [0, 0, 1, 1], [], []>} : vector<8x96xbf16>, vector<96x32xbf16>, vector<8x32xf32> -> vector<8x32xf32>
    %c0_28 = arith.constant 0 : index
    %c0_29 = arith.constant 0 : index
    %c0_30 = arith.constant 0 : index
    %71 = vector.load %arg10[%c0_28, %c0_29, %c0_30] : memref<3x1x32xf32, #tpu.memory_space<vmem>>, vector<1x1x32xf32>
    %72 = vector.shape_cast %71 : vector<1x1x32xf32> to vector<1x32xf32>
    %73 = vector.broadcast %72 : vector<1x32xf32> to vector<8x32xf32>
    %74 = arith.addf %70, %73 : vector<8x32xf32>
    %cst_31 = arith.constant 0.000000e+00 : f32
    %75 = vector.broadcast %cst_31 : f32 to vector<8x32xf32>
    %76 = arith.maximumf %74, %75 : vector<8x32xf32>
    %c0_32 = arith.constant 0 : index
    %c0_33 = arith.constant 0 : index
    %c0_34 = arith.constant 0 : index
    %77 = vector.load %arg11[%c0_32, %c0_33, %c0_34] : memref<3x1x32xf32, #tpu.memory_space<vmem>>, vector<1x1x32xf32>
    %78 = vector.shape_cast %77 : vector<1x1x32xf32> to vector<1x32xf32>
    %c0_35 = arith.constant 0 : index
    %c0_36 = arith.constant 0 : index
    %c0_37 = arith.constant 0 : index
    %79 = vector.load %arg12[%c0_35, %c0_36, %c0_37] : memref<3x1x32xf32, #tpu.memory_space<vmem>>, vector<1x1x32xf32>
    %80 = vector.shape_cast %79 : vector<1x1x32xf32> to vector<1x32xf32>
    %cst_38 = arith.constant dense<0.000000e+00> : vector<8xf32>
    %81 = vector.multi_reduction <add>, %76, %cst_38 [1] : vector<8x32xf32> to vector<8xf32>
    %82 = vector.shape_cast %81 : vector<8xf32> to vector<8x1xf32>
    %cst_39 = arith.constant 3.200000e+01 : f32
    %83 = vector.broadcast %cst_39 : f32 to vector<8x1xf32>
    %84 = arith.divf %82, %83 : vector<8x1xf32>
    %85 = vector.broadcast %84 : vector<8x1xf32> to vector<8x32xf32>
    %86 = arith.subf %76, %85 : vector<8x32xf32>
    %87 = arith.mulf %86, %86 : vector<8x32xf32>
    %cst_40 = arith.constant dense<0.000000e+00> : vector<8xf32>
    %88 = vector.multi_reduction <add>, %87, %cst_40 [1] : vector<8x32xf32> to vector<8xf32>
    %89 = vector.shape_cast %88 : vector<8xf32> to vector<8x1xf32>
    %cst_41 = arith.constant 3.200000e+01 : f32
    %90 = vector.broadcast %cst_41 : f32 to vector<8x1xf32>
    %91 = arith.divf %89, %90 : vector<8x1xf32>
    %92 = vector.broadcast %84 : vector<8x1xf32> to vector<8x32xf32>
    %93 = arith.subf %76, %92 : vector<8x32xf32>
    %cst_42 = arith.constant 9.99999974E-6 : f32
    %94 = vector.broadcast %cst_42 : f32 to vector<8x1xf32>
    %95 = arith.addf %91, %94 : vector<8x1xf32>
    %96 = math.rsqrt %95 : vector<8x1xf32>
    %97 = vector.broadcast %96 : vector<8x1xf32> to vector<8x32xf32>
    %98 = arith.mulf %93, %97 : vector<8x32xf32>
    %99 = vector.broadcast %78 : vector<1x32xf32> to vector<8x32xf32>
    %100 = arith.mulf %98, %99 : vector<8x32xf32>
    %101 = vector.broadcast %80 : vector<1x32xf32> to vector<8x32xf32>
    %102 = arith.addf %100, %101 : vector<8x32xf32>
    %c0_43 = arith.constant 0 : index
    %c0_44 = arith.constant 0 : index
    %c0_45 = arith.constant 0 : index
    %103 = vector.load %arg13[%c0_43, %c0_44, %c0_45] : memref<3x1x32xf32, #tpu.memory_space<vmem>>, vector<1x1x32xf32>
    %104 = vector.shape_cast %103 : vector<1x1x32xf32> to vector<1x32xf32>
    %105 = vector.broadcast %104 : vector<1x32xf32> to vector<8x32xf32>
    %106 = arith.mulf %102, %105 : vector<8x32xf32>
    %cst_46 = arith.constant dense<0.000000e+00> : vector<8xf32>
    %107 = vector.multi_reduction <add>, %106, %cst_46 [1] : vector<8x32xf32> to vector<8xf32>
    %108 = vector.shape_cast %107 : vector<8xf32> to vector<8x1xf32>
    %c0_47 = arith.constant 0 : index
    %c0_48 = arith.constant 0 : index
    %c0_49 = arith.constant 0 : index
    %109 = vector.load %arg14[%c0_47, %c0_48, %c0_49] : memref<3x1x1xf32, #tpu.memory_space<vmem>>, vector<1x1x1xf32>
    %110 = vector.shape_cast %109 : vector<1x1x1xf32> to vector<1x1xf32>
    %111 = vector.broadcast %110 : vector<1x1xf32> to vector<8x1xf32>
    %112 = arith.addf %108, %111 : vector<8x1xf32>
    %cst_50 = arith.constant 0.000000e+00 : f32
    %113 = vector.broadcast %cst_50 : f32 to vector<8x1xf32>
    %114 = arith.select %5, %113, %112 : vector<8x1xi1>, vector<8x1xf32>
    %115 = vector.extract_strided_slice %28 {offsets = [0, 32], sizes = [8, 32], strides = [1, 1]} : vector<8x64xf32> to vector<8x32xf32>
    %c1 = arith.constant 1 : index
    %c0_51 = arith.constant 0 : index
    %c0_52 = arith.constant 0 : index
    %116 = vector.load %arg7[%c1, %c0_51, %c0_52] : memref<3x1x32xf32, #tpu.memory_space<vmem>>, vector<1x1x32xf32>
    %117 = vector.shape_cast %116 : vector<1x1x32xf32> to vector<1x32xf32>
    %c1_53 = arith.constant 1 : index
    %c0_54 = arith.constant 0 : index
    %c0_55 = arith.constant 0 : index
    %118 = vector.load %arg8[%c1_53, %c0_54, %c0_55] : memref<3x1x32xf32, #tpu.memory_space<vmem>>, vector<1x1x32xf32>
    %119 = vector.shape_cast %118 : vector<1x1x32xf32> to vector<1x32xf32>
    %cst_56 = arith.constant dense<0.000000e+00> : vector<8xf32>
    %120 = vector.multi_reduction <add>, %115, %cst_56 [1] : vector<8x32xf32> to vector<8xf32>
    %121 = vector.shape_cast %120 : vector<8xf32> to vector<8x1xf32>
    %cst_57 = arith.constant 3.200000e+01 : f32
    %122 = vector.broadcast %cst_57 : f32 to vector<8x1xf32>
    %123 = arith.divf %121, %122 : vector<8x1xf32>
    %124 = vector.broadcast %123 : vector<8x1xf32> to vector<8x32xf32>
    %125 = arith.subf %115, %124 : vector<8x32xf32>
    %126 = arith.mulf %125, %125 : vector<8x32xf32>
    %cst_58 = arith.constant dense<0.000000e+00> : vector<8xf32>
    %127 = vector.multi_reduction <add>, %126, %cst_58 [1] : vector<8x32xf32> to vector<8xf32>
    %128 = vector.shape_cast %127 : vector<8xf32> to vector<8x1xf32>
    %cst_59 = arith.constant 3.200000e+01 : f32
    %129 = vector.broadcast %cst_59 : f32 to vector<8x1xf32>
    %130 = arith.divf %128, %129 : vector<8x1xf32>
    %131 = vector.broadcast %123 : vector<8x1xf32> to vector<8x32xf32>
    %132 = arith.subf %115, %131 : vector<8x32xf32>
    %cst_60 = arith.constant 9.99999974E-6 : f32
    %133 = vector.broadcast %cst_60 : f32 to vector<8x1xf32>
    %134 = arith.addf %130, %133 : vector<8x1xf32>
    %135 = math.rsqrt %134 : vector<8x1xf32>
    %136 = vector.broadcast %135 : vector<8x1xf32> to vector<8x32xf32>
    %137 = arith.mulf %132, %136 : vector<8x32xf32>
    %138 = vector.broadcast %117 : vector<1x32xf32> to vector<8x32xf32>
    %139 = arith.mulf %137, %138 : vector<8x32xf32>
    %140 = vector.broadcast %119 : vector<1x32xf32> to vector<8x32xf32>
    %141 = arith.addf %139, %140 : vector<8x32xf32>
    %c1_i32_61 = arith.constant 1 : i32
    %142 = tpu.dynamic_rotate %141 by %c1_i32_61 dim 0 : vector<8x32xf32>, i32 -> vector<8x32xf32>
    %cst_62 = arith.constant 0.000000e+00 : f32
    %143 = vector.shape_cast %7 : vector<8x1xi1> to vector<8x1xi1>
    %144 = vector.broadcast %143 : vector<8x1xi1> to vector<8x32xi1>
    %145 = vector.broadcast %cst_62 : f32 to vector<8x32xf32>
    %146 = arith.select %144, %142, %145 : vector<8x32xi1>, vector<8x32xf32>
    %c7_i32_63 = arith.constant 7 : i32
    %147 = tpu.dynamic_rotate %141 by %c7_i32_63 dim 0 : vector<8x32xf32>, i32 -> vector<8x32xf32>
    %cst_64 = arith.constant 0.000000e+00 : f32
    %148 = vector.shape_cast %9 : vector<8x1xi1> to vector<8x1xi1>
    %149 = vector.broadcast %148 : vector<8x1xi1> to vector<8x32xi1>
    %150 = vector.broadcast %cst_64 : f32 to vector<8x32xf32>
    %151 = arith.select %149, %147, %150 : vector<8x32xi1>, vector<8x32xf32>
    %152 = tpu.concatenate %146, %141, %151 in 1 : vector<8x32xf32>, vector<8x32xf32>, vector<8x32xf32> -> vector<8x96xf32>
    %153 = arith.truncf %152 : vector<8x96xf32> to vector<8x96xbf16>
    %c1_65 = arith.constant 1 : index
    %c0_66 = arith.constant 0 : index
    %c0_67 = arith.constant 0 : index
    %154 = vector.load %arg9[%c1_65, %c0_66, %c0_67] : memref<3x96x32xbf16, #tpu.memory_space<vmem>>, vector<1x96x32xbf16>
    %155 = vector.shape_cast %154 : vector<1x96x32xbf16> to vector<96x32xbf16>
    %cst_68 = arith.constant dense<0.000000e+00> : vector<8x32xf32>
    %156 = tpu.matmul %153, %155, %cst_68 {dimension_numbers = #tpu.dot_dimension_numbers<[1], [0], [0], [1], [0, 0, 1, 1], [], []>} : vector<8x96xbf16>, vector<96x32xbf16>, vector<8x32xf32> -> vector<8x32xf32>
    %c1_69 = arith.constant 1 : index
    %c0_70 = arith.constant 0 : index
    %c0_71 = arith.constant 0 : index
    %157 = vector.load %arg10[%c1_69, %c0_70, %c0_71] : memref<3x1x32xf32, #tpu.memory_space<vmem>>, vector<1x1x32xf32>
    %158 = vector.shape_cast %157 : vector<1x1x32xf32> to vector<1x32xf32>
    %159 = vector.broadcast %158 : vector<1x32xf32> to vector<8x32xf32>
    %160 = arith.addf %156, %159 : vector<8x32xf32>
    %cst_72 = arith.constant 0.000000e+00 : f32
    %161 = vector.broadcast %cst_72 : f32 to vector<8x32xf32>
    %162 = arith.maximumf %160, %161 : vector<8x32xf32>
    %c1_73 = arith.constant 1 : index
    %c0_74 = arith.constant 0 : index
    %c0_75 = arith.constant 0 : index
    %163 = vector.load %arg11[%c1_73, %c0_74, %c0_75] : memref<3x1x32xf32, #tpu.memory_space<vmem>>, vector<1x1x32xf32>
    %164 = vector.shape_cast %163 : vector<1x1x32xf32> to vector<1x32xf32>
    %c1_76 = arith.constant 1 : index
    %c0_77 = arith.constant 0 : index
    %c0_78 = arith.constant 0 : index
    %165 = vector.load %arg12[%c1_76, %c0_77, %c0_78] : memref<3x1x32xf32, #tpu.memory_space<vmem>>, vector<1x1x32xf32>
    %166 = vector.shape_cast %165 : vector<1x1x32xf32> to vector<1x32xf32>
    %cst_79 = arith.constant dense<0.000000e+00> : vector<8xf32>
    %167 = vector.multi_reduction <add>, %162, %cst_79 [1] : vector<8x32xf32> to vector<8xf32>
    %168 = vector.shape_cast %167 : vector<8xf32> to vector<8x1xf32>
    %cst_80 = arith.constant 3.200000e+01 : f32
    %169 = vector.broadcast %cst_80 : f32 to vector<8x1xf32>
    %170 = arith.divf %168, %169 : vector<8x1xf32>
    %171 = vector.broadcast %170 : vector<8x1xf32> to vector<8x32xf32>
    %172 = arith.subf %162, %171 : vector<8x32xf32>
    %173 = arith.mulf %172, %172 : vector<8x32xf32>
    %cst_81 = arith.constant dense<0.000000e+00> : vector<8xf32>
    %174 = vector.multi_reduction <add>, %173, %cst_81 [1] : vector<8x32xf32> to vector<8xf32>
    %175 = vector.shape_cast %174 : vector<8xf32> to vector<8x1xf32>
    %cst_82 = arith.constant 3.200000e+01 : f32
    %176 = vector.broadcast %cst_82 : f32 to vector<8x1xf32>
    %177 = arith.divf %175, %176 : vector<8x1xf32>
    %178 = vector.broadcast %170 : vector<8x1xf32> to vector<8x32xf32>
    %179 = arith.subf %162, %178 : vector<8x32xf32>
    %cst_83 = arith.constant 9.99999974E-6 : f32
    %180 = vector.broadcast %cst_83 : f32 to vector<8x1xf32>
    %181 = arith.addf %177, %180 : vector<8x1xf32>
    %182 = math.rsqrt %181 : vector<8x1xf32>
    %183 = vector.broadcast %182 : vector<8x1xf32> to vector<8x32xf32>
    %184 = arith.mulf %179, %183 : vector<8x32xf32>
    %185 = vector.broadcast %164 : vector<1x32xf32> to vector<8x32xf32>
    %186 = arith.mulf %184, %185 : vector<8x32xf32>
    %187 = vector.broadcast %166 : vector<1x32xf32> to vector<8x32xf32>
    %188 = arith.addf %186, %187 : vector<8x32xf32>
    %c1_84 = arith.constant 1 : index
    %c0_85 = arith.constant 0 : index
    %c0_86 = arith.constant 0 : index
    %189 = vector.load %arg13[%c1_84, %c0_85, %c0_86] : memref<3x1x32xf32, #tpu.memory_space<vmem>>, vector<1x1x32xf32>
    %190 = vector.shape_cast %189 : vector<1x1x32xf32> to vector<1x32xf32>
    %191 = vector.broadcast %190 : vector<1x32xf32> to vector<8x32xf32>
    %192 = arith.mulf %188, %191 : vector<8x32xf32>
    %cst_87 = arith.constant dense<0.000000e+00> : vector<8xf32>
    %193 = vector.multi_reduction <add>, %192, %cst_87 [1] : vector<8x32xf32> to vector<8xf32>
    %194 = vector.shape_cast %193 : vector<8xf32> to vector<8x1xf32>
    %c1_88 = arith.constant 1 : index
    %c0_89 = arith.constant 0 : index
    %c0_90 = arith.constant 0 : index
    %195 = vector.load %arg14[%c1_88, %c0_89, %c0_90] : memref<3x1x1xf32, #tpu.memory_space<vmem>>, vector<1x1x1xf32>
    %196 = vector.shape_cast %195 : vector<1x1x1xf32> to vector<1x1xf32>
    %197 = vector.broadcast %196 : vector<1x1xf32> to vector<8x1xf32>
    %198 = arith.addf %194, %197 : vector<8x1xf32>
    %cst_91 = arith.constant 0.000000e+00 : f32
    %199 = vector.broadcast %cst_91 : f32 to vector<8x1xf32>
    %200 = arith.select %5, %199, %198 : vector<8x1xi1>, vector<8x1xf32>
    %c0_92 = arith.constant 0 : index
    %c0_93 = arith.constant 0 : index
    %201 = vector.load %arg15[%c0_92, %c0_93] : memref<2x15xf32, #tpu.memory_space<vmem>>, vector<2x15xf32>
    %202 = vector.extract_strided_slice %201 {offsets = [0, 0], sizes = [1, 15], strides = [1, 1]} : vector<2x15xf32> to vector<1x15xf32>
    %203 = vector.broadcast %114 : vector<8x1xf32> to vector<8x15xf32>
    %204 = vector.broadcast %202 : vector<1x15xf32> to vector<8x15xf32>
    %205 = arith.cmpf ogt, %203, %204 : vector<8x15xf32>
    %206 = arith.extui %205 : vector<8x15xi1> to vector<8x15xi32>
    %cst_94 = arith.constant dense<0> : vector<8xi32>
    %207 = vector.multi_reduction <add>, %206, %cst_94 [1] : vector<8x15xi32> to vector<8xi32>
    %208 = vector.shape_cast %207 : vector<8xi32> to vector<8x1xi32>
    %209 = vector.extract_strided_slice %201 {offsets = [1, 0], sizes = [1, 15], strides = [1, 1]} : vector<2x15xf32> to vector<1x15xf32>
    %210 = vector.broadcast %200 : vector<8x1xf32> to vector<8x15xf32>
    %211 = vector.broadcast %209 : vector<1x15xf32> to vector<8x15xf32>
    %212 = arith.cmpf ogt, %210, %211 : vector<8x15xf32>
    %213 = arith.extui %212 : vector<8x15xi1> to vector<8x15xi32>
    %cst_95 = arith.constant dense<0> : vector<8xi32>
    %214 = vector.multi_reduction <add>, %213, %cst_95 [1] : vector<8x15xi32> to vector<8xi32>
    %215 = vector.shape_cast %214 : vector<8xi32> to vector<8x1xi32>
    %216 = tpu.iota {dimensions = array<i32: 1>} : vector<8x32xi32>
    %217 = vector.broadcast %208 : vector<8x1xi32> to vector<8x32xi32>
    %218 = arith.cmpi eq, %216, %217 : vector<8x32xi32>
    %c16_i32 = arith.constant 16 : i32
    %219 = vector.broadcast %c16_i32 : i32 to vector<8x1xi32>
    %220 = arith.addi %215, %219 : vector<8x1xi32>
    %221 = vector.broadcast %220 : vector<8x1xi32> to vector<8x32xi32>
    %222 = arith.cmpi eq, %216, %221 : vector<8x32xi32>
    %223 = arith.ori %218, %222 : vector<8x32xi1>
    %224 = arith.extui %223 : vector<8x32xi1> to vector<8x32xi32>
    %225 = arith.sitofp %224 : vector<8x32xi32> to vector<8x32xf32>
    %226 = arith.truncf %225 : vector<8x32xf32> to vector<8x32xbf16>
    %c0_96 = arith.constant 0 : index
    %c0_97 = arith.constant 0 : index
    %227 = vector.load %arg16[%c0_96, %c0_97] : memref<32x32xbf16, #tpu.memory_space<vmem>>, vector<32x32xbf16>
    %cst_98 = arith.constant dense<0.000000e+00> : vector<8x32xf32>
    %228 = tpu.matmul %226, %227, %cst_98 {dimension_numbers = #tpu.dot_dimension_numbers<[1], [0], [0], [1], [0, 0, 1, 1], [], []>} : vector<8x32xbf16>, vector<32x32xbf16>, vector<8x32xf32> -> vector<8x32xf32>
    %229 = arith.addf %0, %228 : vector<8x32xf32>
    %c0_99 = arith.constant 0 : index
    %c0_100 = arith.constant 0 : index
    %230 = vector.load %arg17[%c0_99, %c0_100] : memref<8x32xf32, #tpu.memory_space<vmem>>, vector<8x32xf32>
    tpu.vector_store %arg17[%c0_99, %c0_100], %229 {strides = array<i32>} : memref<8x32xf32, #tpu.memory_space<vmem>>, vector<8x32xf32>,
    %c1_i32_101 = arith.constant 1 : i32
    %231 = tpu.dynamic_rotate %229 by %c1_i32_101 dim 0 : vector<8x32xf32>, i32 -> vector<8x32xf32>
    %cst_102 = arith.constant 0.000000e+00 : f32
    %232 = vector.shape_cast %7 : vector<8x1xi1> to vector<8x1xi1>
    %233 = vector.broadcast %232 : vector<8x1xi1> to vector<8x32xi1>
    %234 = vector.broadcast %cst_102 : f32 to vector<8x32xf32>
    %235 = arith.select %233, %231, %234 : vector<8x32xi1>, vector<8x32xf32>
    %c7_i32_103 = arith.constant 7 : i32
    %236 = tpu.dynamic_rotate %229 by %c7_i32_103 dim 0 : vector<8x32xf32>, i32 -> vector<8x32xf32>
    %cst_104 = arith.constant 0.000000e+00 : f32
    %237 = vector.shape_cast %9 : vector<8x1xi1> to vector<8x1xi1>
    %238 = vector.broadcast %237 : vector<8x1xi1> to vector<8x32xi1>
    %239 = vector.broadcast %cst_104 : f32 to vector<8x32xf32>
    %240 = arith.select %238, %236, %239 : vector<8x32xi1>, vector<8x32xf32>
    %241 = tpu.concatenate %235, %229, %240 in 1 : vector<8x32xf32>, vector<8x32xf32>, vector<8x32xf32> -> vector<8x96xf32>
    %242 = arith.truncf %241 : vector<8x96xf32> to vector<8x96xbf16>
    %c0_105 = arith.constant 0 : index
    %c0_106 = arith.constant 0 : index
    %243 = vector.load %arg5[%c0_105, %c0_106] : memref<96x32xbf16, #tpu.memory_space<vmem>>, vector<96x32xbf16>
    %cst_107 = arith.constant dense<0.000000e+00> : vector<8x32xf32>
    %244 = tpu.matmul %242, %243, %cst_107 {dimension_numbers = #tpu.dot_dimension_numbers<[1], [0], [0], [1], [0, 0, 1, 1], [], []>} : vector<8x96xbf16>, vector<96x32xbf16>, vector<8x32xf32> -> vector<8x32xf32>
    %c0_108 = arith.constant 0 : index
    %c0_109 = arith.constant 0 : index
    %245 = vector.load %arg6[%c0_108, %c0_109] : memref<1x32xf32, #tpu.memory_space<vmem>>, vector<1x32xf32>
    %246 = vector.broadcast %245 : vector<1x32xf32> to vector<8x32xf32>
    %247 = arith.addf %244, %246 : vector<8x32xf32>
    %cst_110 = arith.constant 0.000000e+00 : f32
    %248 = vector.broadcast %cst_110 : f32 to vector<8x32xf32>
    %249 = arith.maximumf %247, %248 : vector<8x32xf32>
    %c2 = arith.constant 2 : index
    %c0_111 = arith.constant 0 : index
    %c0_112 = arith.constant 0 : index
    %250 = vector.load %arg7[%c2, %c0_111, %c0_112] : memref<3x1x32xf32, #tpu.memory_space<vmem>>, vector<1x1x32xf32>
    %251 = vector.shape_cast %250 : vector<1x1x32xf32> to vector<1x32xf32>
    %c2_113 = arith.constant 2 : index
    %c0_114 = arith.constant 0 : index
    %c0_115 = arith.constant 0 : index
    %252 = vector.load %arg8[%c2_113, %c0_114, %c0_115] : memref<3x1x32xf32, #tpu.memory_space<vmem>>, vector<1x1x32xf32>
    %253 = vector.shape_cast %252 : vector<1x1x32xf32> to vector<1x32xf32>
    %cst_116 = arith.constant dense<0.000000e+00> : vector<8xf32>
    %254 = vector.multi_reduction <add>, %249, %cst_116 [1] : vector<8x32xf32> to vector<8xf32>
    %255 = vector.shape_cast %254 : vector<8xf32> to vector<8x1xf32>
    %cst_117 = arith.constant 3.200000e+01 : f32
    %256 = vector.broadcast %cst_117 : f32 to vector<8x1xf32>
    %257 = arith.divf %255, %256 : vector<8x1xf32>
    %258 = vector.broadcast %257 : vector<8x1xf32> to vector<8x32xf32>
    %259 = arith.subf %249, %258 : vector<8x32xf32>
    %260 = arith.mulf %259, %259 : vector<8x32xf32>
    %cst_118 = arith.constant dense<0.000000e+00> : vector<8xf32>
    %261 = vector.multi_reduction <add>, %260, %cst_118 [1] : vector<8x32xf32> to vector<8xf32>
    %262 = vector.shape_cast %261 : vector<8xf32> to vector<8x1xf32>
    %cst_119 = arith.constant 3.200000e+01 : f32
    %263 = vector.broadcast %cst_119 : f32 to vector<8x1xf32>
    %264 = arith.divf %262, %263 : vector<8x1xf32>
    %265 = vector.broadcast %257 : vector<8x1xf32> to vector<8x32xf32>
    %266 = arith.subf %249, %265 : vector<8x32xf32>
    %cst_120 = arith.constant 9.99999974E-6 : f32
    %267 = vector.broadcast %cst_120 : f32 to vector<8x1xf32>
    %268 = arith.addf %264, %267 : vector<8x1xf32>
    %269 = math.rsqrt %268 : vector<8x1xf32>
    %270 = vector.broadcast %269 : vector<8x1xf32> to vector<8x32xf32>
    %271 = arith.mulf %266, %270 : vector<8x32xf32>
    %272 = vector.broadcast %251 : vector<1x32xf32> to vector<8x32xf32>
    %273 = arith.mulf %271, %272 : vector<8x32xf32>
    %274 = vector.broadcast %253 : vector<1x32xf32> to vector<8x32xf32>
    %275 = arith.addf %273, %274 : vector<8x32xf32>
    %c1_i32_121 = arith.constant 1 : i32
    %276 = tpu.dynamic_rotate %275 by %c1_i32_121 dim 0 : vector<8x32xf32>, i32 -> vector<8x32xf32>
    %cst_122 = arith.constant 0.000000e+00 : f32
    %277 = vector.shape_cast %7 : vector<8x1xi1> to vector<8x1xi1>
    %278 = vector.broadcast %277 : vector<8x1xi1> to vector<8x32xi1>
    %279 = vector.broadcast %cst_122 : f32 to vector<8x32xf32>
    %280 = arith.select %278, %276, %279 : vector<8x32xi1>, vector<8x32xf32>
    %c7_i32_123 = arith.constant 7 : i32
    %281 = tpu.dynamic_rotate %275 by %c7_i32_123 dim 0 : vector<8x32xf32>, i32 -> vector<8x32xf32>
    %cst_124 = arith.constant 0.000000e+00 : f32
    %282 = vector.shape_cast %9 : vector<8x1xi1> to vector<8x1xi1>
    %283 = vector.broadcast %282 : vector<8x1xi1> to vector<8x32xi1>
    %284 = vector.broadcast %cst_124 : f32 to vector<8x32xf32>
    %285 = arith.select %283, %281, %284 : vector<8x32xi1>, vector<8x32xf32>
    %286 = tpu.concatenate %280, %275, %285 in 1 : vector<8x32xf32>, vector<8x32xf32>, vector<8x32xf32> -> vector<8x96xf32>
    %287 = arith.truncf %286 : vector<8x96xf32> to vector<8x96xbf16>
    %c2_125 = arith.constant 2 : index
    %c0_126 = arith.constant 0 : index
    %c0_127 = arith.constant 0 : index
    %288 = vector.load %arg9[%c2_125, %c0_126, %c0_127] : memref<3x96x32xbf16, #tpu.memory_space<vmem>>, vector<1x96x32xbf16>
    %289 = vector.shape_cast %288 : vector<1x96x32xbf16> to vector<96x32xbf16>
    %cst_128 = arith.constant dense<0.000000e+00> : vector<8x32xf32>
    %290 = tpu.matmul %287, %289, %cst_128 {dimension_numbers = #tpu.dot_dimension_numbers<[1], [0], [0], [1], [0, 0, 1, 1], [], []>} : vector<8x96xbf16>, vector<96x32xbf16>, vector<8x32xf32> -> vector<8x32xf32>
    %c2_129 = arith.constant 2 : index
    %c0_130 = arith.constant 0 : index
    %c0_131 = arith.constant 0 : index
    %291 = vector.load %arg10[%c2_129, %c0_130, %c0_131] : memref<3x1x32xf32, #tpu.memory_space<vmem>>, vector<1x1x32xf32>
    %292 = vector.shape_cast %291 : vector<1x1x32xf32> to vector<1x32xf32>
    %293 = vector.broadcast %292 : vector<1x32xf32> to vector<8x32xf32>
    %294 = arith.addf %290, %293 : vector<8x32xf32>
    %cst_132 = arith.constant 0.000000e+00 : f32
    %295 = vector.broadcast %cst_132 : f32 to vector<8x32xf32>
    %296 = arith.maximumf %294, %295 : vector<8x32xf32>
    %c2_133 = arith.constant 2 : index
    %c0_134 = arith.constant 0 : index
    %c0_135 = arith.constant 0 : index
    %297 = vector.load %arg11[%c2_133, %c0_134, %c0_135] : memref<3x1x32xf32, #tpu.memory_space<vmem>>, vector<1x1x32xf32>
    %298 = vector.shape_cast %297 : vector<1x1x32xf32> to vector<1x32xf32>
    %c2_136 = arith.constant 2 : index
    %c0_137 = arith.constant 0 : index
    %c0_138 = arith.constant 0 : index
    %299 = vector.load %arg12[%c2_136, %c0_137, %c0_138] : memref<3x1x32xf32, #tpu.memory_space<vmem>>, vector<1x1x32xf32>
    %300 = vector.shape_cast %299 : vector<1x1x32xf32> to vector<1x32xf32>
    %cst_139 = arith.constant dense<0.000000e+00> : vector<8xf32>
    %301 = vector.multi_reduction <add>, %296, %cst_139 [1] : vector<8x32xf32> to vector<8xf32>
    %302 = vector.shape_cast %301 : vector<8xf32> to vector<8x1xf32>
    %cst_140 = arith.constant 3.200000e+01 : f32
    %303 = vector.broadcast %cst_140 : f32 to vector<8x1xf32>
    %304 = arith.divf %302, %303 : vector<8x1xf32>
    %305 = vector.broadcast %304 : vector<8x1xf32> to vector<8x32xf32>
    %306 = arith.subf %296, %305 : vector<8x32xf32>
    %307 = arith.mulf %306, %306 : vector<8x32xf32>
    %cst_141 = arith.constant dense<0.000000e+00> : vector<8xf32>
    %308 = vector.multi_reduction <add>, %307, %cst_141 [1] : vector<8x32xf32> to vector<8xf32>
    %309 = vector.shape_cast %308 : vector<8xf32> to vector<8x1xf32>
    %cst_142 = arith.constant 3.200000e+01 : f32
    %310 = vector.broadcast %cst_142 : f32 to vector<8x1xf32>
    %311 = arith.divf %309, %310 : vector<8x1xf32>
    %312 = vector.broadcast %304 : vector<8x1xf32> to vector<8x32xf32>
    %313 = arith.subf %296, %312 : vector<8x32xf32>
    %cst_143 = arith.constant 9.99999974E-6 : f32
    %314 = vector.broadcast %cst_143 : f32 to vector<8x1xf32>
    %315 = arith.addf %311, %314 : vector<8x1xf32>
    %316 = math.rsqrt %315 : vector<8x1xf32>
    %317 = vector.broadcast %316 : vector<8x1xf32> to vector<8x32xf32>
    %318 = arith.mulf %313, %317 : vector<8x32xf32>
    %319 = vector.broadcast %298 : vector<1x32xf32> to vector<8x32xf32>
    %320 = arith.mulf %318, %319 : vector<8x32xf32>
    %321 = vector.broadcast %300 : vector<1x32xf32> to vector<8x32xf32>
    %322 = arith.addf %320, %321 : vector<8x32xf32>
    %c2_144 = arith.constant 2 : index
    %c0_145 = arith.constant 0 : index
    %c0_146 = arith.constant 0 : index
    %323 = vector.load %arg13[%c2_144, %c0_145, %c0_146] : memref<3x1x32xf32, #tpu.memory_space<vmem>>, vector<1x1x32xf32>
    %324 = vector.shape_cast %323 : vector<1x1x32xf32> to vector<1x32xf32>
    %325 = vector.broadcast %324 : vector<1x32xf32> to vector<8x32xf32>
    %326 = arith.mulf %322, %325 : vector<8x32xf32>
    %cst_147 = arith.constant dense<0.000000e+00> : vector<8xf32>
    %327 = vector.multi_reduction <add>, %326, %cst_147 [1] : vector<8x32xf32> to vector<8xf32>
    %328 = vector.shape_cast %327 : vector<8xf32> to vector<8x1xf32>
    %c2_148 = arith.constant 2 : index
    %c0_149 = arith.constant 0 : index
    %c0_150 = arith.constant 0 : index
    %329 = vector.load %arg14[%c2_148, %c0_149, %c0_150] : memref<3x1x1xf32, #tpu.memory_space<vmem>>, vector<1x1x1xf32>
    %330 = vector.shape_cast %329 : vector<1x1x1xf32> to vector<1x1xf32>
    %331 = vector.broadcast %330 : vector<1x1xf32> to vector<8x1xf32>
    %332 = arith.addf %328, %331 : vector<8x1xf32>
    %cst_151 = arith.constant 0.000000e+00 : f32
    %333 = vector.broadcast %cst_151 : f32 to vector<8x1xf32>
    %334 = arith.select %5, %333, %332 : vector<8x1xi1>, vector<8x1xf32>
    %335 = math.exp %334 : vector<8x1xf32>
    %cst_152 = arith.constant 1.000000e+00 : f32
    %336 = vector.broadcast %cst_152 : f32 to vector<8x1xf32>
    %337 = arith.subf %335, %336 : vector<8x1xf32>
    %338 = math.roundeven %337 : vector<8x1xf32>
    %cst_153 = arith.constant 0.000000e+00 : f32
    %339 = vector.broadcast %cst_153 : f32 to vector<8x1xf32>
    %340 = arith.maximumf %338, %339 : vector<8x1xf32>
    %341 = tpu.concatenate %114, %200, %334, %340 in 1 : vector<8x1xf32>, vector<8x1xf32>, vector<8x1xf32>, vector<8x1xf32> -> vector<8x4xf32>
    %342 = tpu.transpose %341, [1, 0] : vector<8x4xf32> -> vector<4x8xf32>
    %c0_154 = arith.constant 0 : index
    %c0_155 = arith.constant 0 : index
    %c0_156 = arith.constant 0 : index
    %343 = vector.load %arg18[%c0_154, %c0_155, %c0_156] : memref<1x4x8xf32, #tpu.memory_space<vmem>>, vector<1x4x8xf32>
    %344 = vector.shape_cast %343 : vector<1x4x8xf32> to vector<4x8xf32>
    %345 = vector.shape_cast %342 : vector<4x8xf32> to vector<1x4x8xf32>
    tpu.vector_store %arg18[%c0_154, %c0_155, %c0_156], %345 {strides = array<i32>} : memref<1x4x8xf32, #tpu.memory_space<vmem>>, vector<1x4x8xf32>,
    %346 = vector.extract_strided_slice %342 {offsets = [3, 0], sizes = [1, 8], strides = [1, 1]} : vector<4x8xf32> to vector<1x8xf32>
    %cst_157 = arith.constant dense<0.000000e+00> : vector<1xf32>
    %347 = vector.multi_reduction <add>, %346, %cst_157 [1] : vector<1x8xf32> to vector<1xf32>
    %348 = vector.shape_cast %347 : vector<1xf32> to vector<1x1xf32>
    %c0_158 = arith.constant 0 : index
    %c0_159 = arith.constant 0 : index
    %c0_160 = arith.constant 0 : index
    %349 = vector.load %arg19[%c0_158, %c0_159, %c0_160] : memref<1x1x1xf32, #tpu.memory_space<vmem>>, vector<1x1x1xf32>
    %350 = vector.shape_cast %349 : vector<1x1x1xf32> to vector<1x1xf32>
    %351 = vector.shape_cast %348 : vector<1x1xf32> to vector<1x1x1xf32>
    tpu.vector_store %arg19[%c0_158, %c0_159, %c0_160], %351 {strides = array<i32>} : memref<1x1x1xf32, #tpu.memory_space<vmem>>, vector<1x1x1xf32>,
    return
  }
  func.func @transform_0(%arg0: i32, %arg1: memref<2xi32, #tpu.memory_space<smem>>) -> (i32, i32) {
    %c0_i32 = arith.constant 0 : i32
    %c0_i32_0 = arith.constant 0 : i32
    return %arg0, %c0_i32 : i32, i32
  }
  func.func @transform_1(%arg0: i32, %arg1: memref<2xi32, #tpu.memory_space<smem>>) -> (i32, i32) {
    %c0_i32 = arith.constant 0 : i32
    %c0_i32_0 = arith.constant 0 : i32
    %c0_i32_1 = arith.constant 0 : i32
    return %c0_i32, %c0_i32_0 : i32, i32
  }
  func.func @transform_2(%arg0: i32, %arg1: memref<2xi32, #tpu.memory_space<smem>>) -> (i32, i32) {
    %c0_i32 = arith.constant 0 : i32
    %c0_i32_0 = arith.constant 0 : i32
    %c0_i32_1 = arith.constant 0 : i32
    return %c0_i32, %c0_i32_0 : i32, i32
  }
  func.func @transform_3(%arg0: i32, %arg1: memref<2xi32, #tpu.memory_space<smem>>) -> (i32, i32) {
    %c0_i32 = arith.constant 0 : i32
    %c0_i32_0 = arith.constant 0 : i32
    %c0_i32_1 = arith.constant 0 : i32
    return %c0_i32, %c0_i32_0 : i32, i32
  }
  func.func @transform_4(%arg0: i32, %arg1: memref<2xi32, #tpu.memory_space<smem>>) -> (i32, i32) {
    %c0_i32 = arith.constant 0 : i32
    %c0_i32_0 = arith.constant 0 : i32
    %c0_i32_1 = arith.constant 0 : i32
    return %c0_i32, %c0_i32_0 : i32, i32
  }
  func.func @transform_5(%arg0: i32, %arg1: memref<2xi32, #tpu.memory_space<smem>>) -> (i32, i32, i32) {
    %c0_i32 = arith.constant 0 : i32
    %c0_i32_0 = arith.constant 0 : i32
    %c0_i32_1 = arith.constant 0 : i32
    %c0_i32_2 = arith.constant 0 : i32
    return %c0_i32, %c0_i32_0, %c0_i32_1 : i32, i32, i32
  }
  func.func @transform_6(%arg0: i32, %arg1: memref<2xi32, #tpu.memory_space<smem>>) -> (i32, i32, i32) {
    %c0_i32 = arith.constant 0 : i32
    %c0_i32_0 = arith.constant 0 : i32
    %c0_i32_1 = arith.constant 0 : i32
    %c0_i32_2 = arith.constant 0 : i32
    return %c0_i32, %c0_i32_0, %c0_i32_1 : i32, i32, i32
  }
  func.func @transform_7(%arg0: i32, %arg1: memref<2xi32, #tpu.memory_space<smem>>) -> (i32, i32, i32) {
    %c0_i32 = arith.constant 0 : i32
    %c0_i32_0 = arith.constant 0 : i32
    %c0_i32_1 = arith.constant 0 : i32
    %c0_i32_2 = arith.constant 0 : i32
    return %c0_i32, %c0_i32_0, %c0_i32_1 : i32, i32, i32
  }
  func.func @transform_8(%arg0: i32, %arg1: memref<2xi32, #tpu.memory_space<smem>>) -> (i32, i32, i32) {
    %c0_i32 = arith.constant 0 : i32
    %c0_i32_0 = arith.constant 0 : i32
    %c0_i32_1 = arith.constant 0 : i32
    %c0_i32_2 = arith.constant 0 : i32
    return %c0_i32, %c0_i32_0, %c0_i32_1 : i32, i32, i32
  }
  func.func @transform_9(%arg0: i32, %arg1: memref<2xi32, #tpu.memory_space<smem>>) -> (i32, i32, i32) {
    %c0_i32 = arith.constant 0 : i32
    %c0_i32_0 = arith.constant 0 : i32
    %c0_i32_1 = arith.constant 0 : i32
    %c0_i32_2 = arith.constant 0 : i32
    return %c0_i32, %c0_i32_0, %c0_i32_1 : i32, i32, i32
  }
  func.func @transform_10(%arg0: i32, %arg1: memref<2xi32, #tpu.memory_space<smem>>) -> (i32, i32, i32) {
    %c0_i32 = arith.constant 0 : i32
    %c0_i32_0 = arith.constant 0 : i32
    %c0_i32_1 = arith.constant 0 : i32
    %c0_i32_2 = arith.constant 0 : i32
    return %c0_i32, %c0_i32_0, %c0_i32_1 : i32, i32, i32
  }
  func.func @transform_11(%arg0: i32, %arg1: memref<2xi32, #tpu.memory_space<smem>>) -> (i32, i32, i32) {
    %c0_i32 = arith.constant 0 : i32
    %c0_i32_0 = arith.constant 0 : i32
    %c0_i32_1 = arith.constant 0 : i32
    %c0_i32_2 = arith.constant 0 : i32
    return %c0_i32, %c0_i32_0, %c0_i32_1 : i32, i32, i32
  }
  func.func @transform_12(%arg0: i32, %arg1: memref<2xi32, #tpu.memory_space<smem>>) -> (i32, i32, i32) {
    %c0_i32 = arith.constant 0 : i32
    %c0_i32_0 = arith.constant 0 : i32
    %c0_i32_1 = arith.constant 0 : i32
    %c0_i32_2 = arith.constant 0 : i32
    return %c0_i32, %c0_i32_0, %c0_i32_1 : i32, i32, i32
  }
  func.func @transform_13(%arg0: i32, %arg1: memref<2xi32, #tpu.memory_space<smem>>) -> (i32, i32) {
    %c0_i32 = arith.constant 0 : i32
    %c0_i32_0 = arith.constant 0 : i32
    %c0_i32_1 = arith.constant 0 : i32
    return %c0_i32, %c0_i32_0 : i32, i32
  }
  func.func @transform_14(%arg0: i32, %arg1: memref<2xi32, #tpu.memory_space<smem>>) -> (i32, i32) {
    %c0_i32 = arith.constant 0 : i32
    %c0_i32_0 = arith.constant 0 : i32
    %c0_i32_1 = arith.constant 0 : i32
    return %c0_i32, %c0_i32_0 : i32, i32
  }
  func.func @transform_15(%arg0: i32, %arg1: memref<2xi32, #tpu.memory_space<smem>>) -> (i32, i32) {
    %c0_i32 = arith.constant 0 : i32
    %c0_i32_0 = arith.constant 0 : i32
    return %arg0, %c0_i32 : i32, i32
  }
  func.func @transform_16(%arg0: i32, %arg1: memref<2xi32, #tpu.memory_space<smem>>) -> (i32, i32, i32) {
    %c0_i32 = arith.constant 0 : i32
    %c0_i32_0 = arith.constant 0 : i32
    %c0_i32_1 = arith.constant 0 : i32
    return %arg0, %c0_i32, %c0_i32_0 : i32, i32, i32
  }
  func.func @transform_17(%arg0: i32, %arg1: memref<2xi32, #tpu.memory_space<smem>>) -> (i32, i32, i32) {
    %c0_i32 = arith.constant 0 : i32
    %c0_i32_0 = arith.constant 0 : i32
    %c0_i32_1 = arith.constant 0 : i32
    return %arg0, %c0_i32, %c0_i32_0 : i32, i32, i32
  }
}

module attributes {stable_mosaic.version = 11 : i64} {
  func.func @_lr_kernel(%arg0: i32, %arg1: i32, %arg2: memref<1x1x8xf32, #tpu.memory_space<vmem>>, %arg3: memref<1x1x8xf32, #tpu.memory_space<vmem>>, %arg4: memref<1x8x32xf32, #tpu.memory_space<vmem>>, %arg5: memref<1x64x32xf32, #tpu.memory_space<vmem>>) attributes {dimension_semantics = [#tpu.dimension_semantics<parallel>, #tpu.dimension_semantics<parallel>], iteration_bounds = array<i64: 2, 2>, scalar_prefetch = 0 : i64, scratch_operands = 0 : i64, tpu.core_type = #tpu.core_type<tc>, window_params = [{transform_indices = @transform_0, window_bounds = array<i64: 1, 1, 8>}, {transform_indices = @transform_1, window_bounds = array<i64: 1, 1, 8>}, {transform_indices = @transform_2, window_bounds = array<i64: 1, 8, 32>}, {transform_indices = @transform_3, window_bounds = array<i64: 1, 64, 32>}]} {
    %c64_i32 = arith.constant 64 : i32
    %0 = arith.muli %arg1, %c64_i32 : i32
    %1 = tpu.iota {dimensions = array<i32: 0>} : vector<64x8xi32>
    %2 = vector.broadcast %0 : i32 to vector<64x8xi32>
    %3 = arith.addi %2, %1 : vector<64x8xi32>
    %4 = arith.sitofp %3 : vector<64x8xi32> to vector<64x8xf32>
    %c0 = arith.constant 0 : index
    %c0_0 = arith.constant 0 : index
    %c0_1 = arith.constant 0 : index
    %5 = vector.load %arg2[%c0, %c0_0, %c0_1] : memref<1x1x8xf32, #tpu.memory_space<vmem>>, vector<1x1x8xf32>
    %6 = vector.shape_cast %5 : vector<1x1x8xf32> to vector<1x8xf32>
    %7 = vector.broadcast %6 : vector<1x8xf32> to vector<64x8xf32>
    %8 = arith.cmpf oge, %4, %7 : vector<64x8xf32>
    %c0_2 = arith.constant 0 : index
    %c0_3 = arith.constant 0 : index
    %c0_4 = arith.constant 0 : index
    %9 = vector.load %arg3[%c0_2, %c0_3, %c0_4] : memref<1x1x8xf32, #tpu.memory_space<vmem>>, vector<1x1x8xf32>
    %10 = vector.shape_cast %9 : vector<1x1x8xf32> to vector<1x8xf32>
    %11 = vector.broadcast %10 : vector<1x8xf32> to vector<64x8xf32>
    %12 = arith.cmpf olt, %4, %11 : vector<64x8xf32>
    %13 = arith.andi %8, %12 : vector<64x8xi1>
    %14 = arith.extui %13 : vector<64x8xi1> to vector<64x8xi32>
    %15 = arith.sitofp %14 : vector<64x8xi32> to vector<64x8xf32>
    %c0_5 = arith.constant 0 : index
    %c0_6 = arith.constant 0 : index
    %c0_7 = arith.constant 0 : index
    %16 = vector.load %arg4[%c0_5, %c0_6, %c0_7] : memref<1x8x32xf32, #tpu.memory_space<vmem>>, vector<1x8x32xf32>
    %17 = vector.shape_cast %16 : vector<1x8x32xf32> to vector<8x32xf32>
    %cst = arith.constant dense<0.000000e+00> : vector<64x32xf32>
    %18 = tpu.matmul %15, %17, %cst {dimension_numbers = #tpu.dot_dimension_numbers<[1], [0], [0], [1], [0, 0, 1, 1], [], []>} : vector<64x8xf32>, vector<8x32xf32>, vector<64x32xf32> -> vector<64x32xf32>
    %c0_8 = arith.constant 0 : index
    %c0_9 = arith.constant 0 : index
    %c0_10 = arith.constant 0 : index
    %19 = vector.load %arg5[%c0_8, %c0_9, %c0_10] : memref<1x64x32xf32, #tpu.memory_space<vmem>>, vector<1x64x32xf32>
    %20 = vector.shape_cast %19 : vector<1x64x32xf32> to vector<64x32xf32>
    %21 = vector.shape_cast %18 : vector<64x32xf32> to vector<1x64x32xf32>
    tpu.vector_store %arg5[%c0_8, %c0_9, %c0_10], %21 {strides = array<i32>} : memref<1x64x32xf32, #tpu.memory_space<vmem>>, vector<1x64x32xf32>,
    return
  }
  func.func @transform_0(%arg0: i32, %arg1: i32) -> (i32, i32, i32) {
    %c0_i32 = arith.constant 0 : i32
    %c0_i32_0 = arith.constant 0 : i32
    %c0_i32_1 = arith.constant 0 : i32
    return %arg0, %c0_i32, %c0_i32_0 : i32, i32, i32
  }
  func.func @transform_1(%arg0: i32, %arg1: i32) -> (i32, i32, i32) {
    %c0_i32 = arith.constant 0 : i32
    %c0_i32_0 = arith.constant 0 : i32
    %c0_i32_1 = arith.constant 0 : i32
    return %arg0, %c0_i32, %c0_i32_0 : i32, i32, i32
  }
  func.func @transform_2(%arg0: i32, %arg1: i32) -> (i32, i32, i32) {
    %c0_i32 = arith.constant 0 : i32
    %c0_i32_0 = arith.constant 0 : i32
    %c0_i32_1 = arith.constant 0 : i32
    return %arg0, %c0_i32, %c0_i32_0 : i32, i32, i32
  }
  func.func @transform_3(%arg0: i32, %arg1: i32) -> (i32, i32, i32) {
    %c0_i32 = arith.constant 0 : i32
    %c0_i32_0 = arith.constant 0 : i32
    return %arg0, %arg1, %c0_i32 : i32, i32, i32
  }
}

</mosaic_0001>

<bundles_post_ra>
// kernel: variance_adaptor_forward.3
= control target key start
LH: loop header
LB: loop body
LE: loop exit
PB: predicated region body
PF: predicated region fallthrough
CT: control target
= control target key end

     0   :  { %s699_s12 = smov 0   ;;  %s701_s13 = smov 0   ;;  %s806_s0 = inlined_call_operand.vmem [shape: f32[2,1,8], index: 0, kind: input, shape index: {}]   ;;  %s807_s1 = inlined_call_operand.vmem [shape: f32[2,1,8], index: 1, kind: input, shape index: {}]   ;;  %s808_s2 = inlined_call_operand.vmem [shape: f32[2,8,32], index: 2, kind: input, shape index: {}]   ;;  %s809_s3 = inlined_call_operand.vmem [shape: f32[2,128,32], index: 3, kind: output, shape index: {}]  }
   0x1   :  { %s703_s14 = smov 0   ;;  %s705_s15 = smov 0  }
   0x2   :  { %s707_s16 = smov 0  }
   0x3 LB: > { %s22_s17 = sadd.s32 1, %s668_s14  ;;  %s25_s18 = sadd.s32 1, %s672_s15  ;;  %s676_s16 = sphi %s707_s16, %s13_s16   ;;  %s672_s15 = sphi %s705_s15, %s821_s15   ;;  %s668_s14 = sphi %s703_s14, %s820_s14   ;;  %s664_s13 = sphi %s701_s13, %s819_s13   ;;  %s660_s12 = sphi %s699_s12, %s818_s12  }
   0x4   : > { %p23_p0 = scmp.ge.s32.totalorder %s22_s17, 2  ;;  %p546_p1 = scmp.ge.s32.totalorder %s676_s16, 1 }
   0x5   : > { %p166_p2 = scmp.lt.s32.totalorder %s676_s16, 5 }
   0x6   : > { %s823_s17 = smov (%p23_p0, %s22_s17), 0  ;;  %s825_s18 = smov (!%p23_p0, %s25_s18), %s672_s15 }
   0x7   : > { %p167_p3 = pnand %p546_p1, %p166_p2  ;;  %p27_p4 = scmp.ge.s32.totalorder %s825_s18, 2 }
   0x8   : > { %p199_p5 = scmp.lt.s32.totalorder (!%p167_p3), %s664_s13, 1  ;;  %s551_s19 = sshll.u32 (!%p167_p3), %s660_s12, 6  ;;  %v220_v0 = vlaneseq (!%p167_p3)  ;;  %vm301_vm0 = vcmask (!%p167_p3), 64512   ;;  %v678_v27 = vmov (!%p167_p3), 0.0  }
   0x9   : > { %s827_s18 = smov (%p27_p4, %s825_s18), 0  ;;  %170 = sbr.rel (%p167_p3) target bundleno = 245 (0xf5), region = 32 }
   0xa   : > { %v229_v1 = vstv (!%p167_p3), %s551_s19  ;;  %v221_v2 = vshrl.u32 (!%p167_p3), %v220_v0, 7  ;;  %s548_s30 = sshll.u32 (!%p167_p3), %s660_s12, 3 }
   0xb   : > { %p212_p6 = scmp.lt.s32.totalorder (!%p167_p3), %s548_s30, 15 }
   0xc   : > { %v230_v3 = vadd.s32 (!%p167_p3), %v229_v1, %v221_v2  ;;  %v222_v4 = vadd.s32 (!%p167_p3), 8, %v221_v2  ;;  %v225_v5 = vadd.s32 (!%p167_p3), 32, %v221_v2  ;;  %v226_v6 = vadd.s32 (!%p167_p3), 40, %v221_v2 }
   0xd   : > { %v223_v8 = vadd.s32 (!%p167_p3), 16, %v221_v2  ;;  %v224_v9 = vadd.s32 (!%p167_p3), 24, %v221_v2  ;;  %v227_v10 = vadd.s32 (!%p167_p3), 48, %v221_v2  ;;  %v228_v20 = vadd.s32 (!%p167_p3), 56, %v221_v2 }
   0xe   : > { %v238_v12 = vcvt.s32.f32 (!%p167_p3), %v230_v3  ;;  %v231_v14 = vadd.s32 (!%p167_p3), %v229_v1, %v222_v4  ;;  %v234_v15 = vadd.s32 (!%p167_p3), %v229_v1, %v225_v5  ;;  %v235_v16 = vadd.s32 (!%p167_p3), %v229_v1, %v226_v6 }
   0xf   : > { %v232_v17 = vadd.s32 (!%p167_p3), %v229_v1, %v223_v8  ;;  %v233_v18 = vadd.s32 (!%p167_p3), %v229_v1, %v224_v9  ;;  %v236_v19 = vadd.s32 (!%p167_p3), %v229_v1, %v227_v10  ;;  %v237_v35 = vadd.s32 (!%p167_p3), %v229_v1, %v228_v20 }
  0x10   : > { %s829_s13 = smov (!%p199_p5, %s664_s13), 1  ;;  %v239_v21 = vcvt.s32.f32 %v231_v14  ;;  %v242_v22 = vcvt.s32.f32 %v234_v15  ;;  %v243_v23 = vcvt.s32.f32 %v235_v16  ;;  %s831_s30 = smov (!%p212_p6, %s548_s30), 15 }
  0x11   : > { %s547_s20 = sshll.u32 %s829_s13, 3  ;;  %s201_s23 = scalar_lea.vmem %s806_s0, %s829_s13  ;;  %v240_v24 = vcvt.s32.f32 %v232_v17  ;;  %v241_v25 = vcvt.s32.f32 %v233_v18  ;;  %v244_v26 = vcvt.s32.f32 %v236_v19  ;;  %v245_v38 = vcvt.s32.f32 %v237_v35 }
  0x12   : > { %s208_s26 = scalar_lea.vmem %s808_s2, %s547_s20  ;;  %s204_s29 = scalar_lea.vmem %s807_s1, %s829_s13  ;;  %v552_v7 = vld [vmem:[%s201_s23] ss:$0 sm:$0xff] }
  0x13   : > { %v300_v11 = vld [vmem:[%s208_s26] sm:$0xff]  ;;  %vm253_vm1 = vcmp.ge.f32.partialorder %v238_v12, %v552_v7  ;;  %vm254_vm4 = vcmp.ge.f32.partialorder %v239_v21, %v552_v7  ;;  %vm257_vm6 = vcmp.ge.f32.partialorder %v242_v22, %v552_v7  ;;  %vm747_vm9 = vcmp.ge.f32.partialorder %v243_v23, %v552_v7  ;;  %s549_s4 = sshll.u32 %s829_s13, 4 }
  0x14   : > { %v553_v13 = vld [vmem:[%s204_s29] ss:$0 sm:$0xff]  ;;  %581 = vmatprep.subr.mxu0 %v300_v11  ;;  %595 = vmatprep.subr.mxu1 %v300_v11  ;;  %vm751_vm11 = vcmp.ge.f32.partialorder %v240_v24, %v552_v7  ;;  %vm755_vm14 = vcmp.ge.f32.partialorder %v241_v25, %v552_v7  ;;  %s215_s5 = sadd.s32 %s549_s4, %s831_s30 }
  0x15   : > { %582 = vmatpush3.msra.mxu0 %v300_v11  ;;  %vm268_vm2 = vcmp.lt.f32.partialorder %v238_v12, %v553_v13  ;;  %596 = vmatpush3.msra.mxu1 %v300_v11  ;;  %vm269_vm5 = vcmp.lt.f32.partialorder %v239_v21, %v553_v13  ;;  %vm272_vm8 = vcmp.lt.f32.partialorder %v242_v22, %v553_v13  ;;  %s550_s6 = sshll.u32 %s215_s5, 3 }
  0x16   : > { %vm276_vm3 = vmand %vm253_vm1, %vm268_vm2  ;;  %vm273_vm10 = vcmp.lt.f32.partialorder %v243_v23, %v553_v13  ;;  %vm270_vm13 = vcmp.lt.f32.partialorder %v240_v24, %v553_v13  ;;  %vm759_vm15 = vcmp.lt.f32.partialorder %v241_v25, %v553_v13  ;;  %vm259_vm2 = vcmp.ge.f32.partialorder %v244_v26, %v552_v7  ;;  %s217_s9 = scalar_lea.vmem %s809_s3, %s550_s6 }
  0x17   : > { %v554_v28 = vsel %vm276_vm3, 1.0, %v678_v27  ;;  %vm277_vm7 = vmand %vm254_vm4, %vm269_vm5  ;;  %vm274_vm3 = vcmp.lt.f32.partialorder %v244_v26, %v553_v13 }
  0x18   : > { %583 = vmatprep.mubr.msk.f32.mxu0 %vm301_vm0, %v554_v28  ;;  %v555_v31 = vsel %vm277_vm7, 1.0, %v678_v27  ;;  %vm280_vm12 = vmand %vm257_vm6, %vm272_vm8  ;;  %vm260_vm7 = vcmp.ge.f32.partialorder %v245_v38, %v552_v7  ;;  %vm275_vm8 = vcmp.lt.f32.partialorder %v245_v38, %v553_v13 }
  0x19   : > { %584 = vmatmul.mubr.msk.f32.vlgmr.msra.gmra.mrb[0].mxu0 %vm301_vm0, %v555_v31  ;;  %v558_v34 = vsel %vm280_vm12, 1.0, %v678_v27  ;;  %vm281_vm1 = vmand %vm747_vm9, %vm273_vm10  ;;  %vm431_vm10 = vcmask 261120  }
  0x1a   : > { %589 = vmatprep.mubr.msk.f32.mxu1 %vm301_vm0, %v558_v34  ;;  %v559_v36 = vsel %vm281_vm1, 1.0, %v678_v27  ;;  %vm278_vm4 = vmand %vm751_vm11, %vm270_vm13 }
  0x1b   : > { %590 = vmatmul.mubr.msk.f32.vlgmr.msra.gmra.mrb[0].mxu1 %vm301_vm0, %v559_v36  ;;  %v556_v37 = vsel %vm278_vm4, 1.0, %v678_v27  ;;  %vm279_vm5 = vmand %vm755_vm14, %vm759_vm15 }
  0x1c   : > { %586 = vmatprep.mubr.msk.f32.mxu0 %vm301_vm0, %v556_v37  ;;  %v557_v39 = vsel %vm279_vm5, 1.0, %v678_v27  ;;  %vm282_vm6 = vmand %vm259_vm2, %vm274_vm3 }
  0x1d   : > { %587 = vmatmul.mubr.msk.f32.gmra.mrb[2].mxu0 %vm301_vm0, %v557_v39  ;;  %v560_v40 = vsel %vm282_vm6, 1.0, %v678_v27  ;;  %vm283_vm9 = vmand %vm260_vm7, %vm275_vm8 }
  0x1e   : > { %592 = vmatprep.mubr.msk.f32.mxu1 %vm301_vm0, %v560_v40  ;;  %v561_v41 = vsel %vm283_vm9, 1.0, %v678_v27 }
  0x1f   : > { %593 = vmatmul.mubr.msk.f32.gmra.mrb[2].mxu1 %vm301_vm0, %v561_v41 }
  0xec   : > { %v585_v42 = vpop.f32.mrb[0].mxu0 }
  0xed   : > { %433 = vst.msk [vmem:[%s217_s9 + $0x8] sm:$0xff] %vm431_vm10, %v585_v42  ;;  %v392_v43 = vpop.f32.mrb[1].mxu0 }
  0xee   : > { %432 = vst.msk [vmem:[%s217_s9] sm:$0xff] %vm431_vm10, %v392_v43  ;;  %v591_v44 = vpop.f32.mrb[0].mxu1 }
  0xef   : > { %437 = vst.msk [vmem:[%s217_s9 + $0x28] sm:$0xff] %vm431_vm10, %v591_v44  ;;  %v412_v45 = vpop.f32.mrb[1].mxu1 }
  0xf0   : > { %436 = vst.msk [vmem:[%s217_s9 + $0x20] sm:$0xff] %vm431_vm10, %v412_v45  ;;  %v588_v46 = vpop.f32.mrb[2].mxu0 }
  0xf1   : > { %435 = vst.msk [vmem:[%s217_s9 + $0x18] sm:$0xff] %vm431_vm10, %v588_v46  ;;  %v402_v47 = vpop.f32.mrb[3].mxu0 }
  0xf2   : > { %434 = vst.msk [vmem:[%s217_s9 + $0x10] sm:$0xff] %vm431_vm10, %v402_v47  ;;  %v594_v48 = vpop.f32.mrb[2].mxu1 }
  0xf3   : > { %439 = vst.msk [vmem:[%s217_s9 + $0x38] sm:$0xff] %vm431_vm10, %v594_v48  ;;  %v422_v49 = vpop.f32.mrb[3].mxu1 }
  0xf4   : > { %438 = vst.msk [vmem:[%s217_s9 + $0x30] sm:$0xff] %vm431_vm10, %v422_v49 }
  0xf5 PF: > { %s13_s16 = sadd.s32 1, %s676_s16   ;;  %s818_s12 = smov %s668_s14 }
  0xf6   : > { %p10_p7 = scmp.ge.s32.totalorder %s13_s16, 6   ;;  %s819_s13 = smov %s672_s15 }
  0xf7   : > { %s820_s14 = smov %s823_s17  ;;  %s821_s15 = smov %s827_s18 }
  0xf8   :  { %12 = sbr.rel (!%p10_p7) target bundleno = 3 (0x3), region = 68 }

// kernel: variance_adaptor_forward.2
= control target key start
LH: loop header
LB: loop body
LE: loop exit
PB: predicated region body
PF: predicated region fallthrough
CT: control target
= control target key end

     0   :  { %s2493_s0 = inlined_call_operand.vmem [shape: s32[2], index: 0, kind: input, shape index: {}]   ;;  %s2494_s1 = inlined_call_operand.vmem [shape: f32[16,32], index: 1, kind: input, shape index: {}]   ;;  %s2495_s2 = inlined_call_operand.vmem [shape: bf16[96,64], index: 2, kind: input, shape index: {}]   ;;  %s2496_s3 = inlined_call_operand.vmem [shape: f32[1,64], index: 3, kind: input, shape index: {}]   ;;  %s2497_s4 = inlined_call_operand.vmem [shape: bf16[96,32], index: 4, kind: input, shape index: {}]   ;;  %s2498_s5 = inlined_call_operand.vmem [shape: f32[1,32], index: 5, kind: input, shape index: {}]   ;;  %s2499_s6 = inlined_call_operand.vmem [shape: f32[3,1,32], index: 6, kind: input, shape index: {}]   ;;  %s2500_s7 = inlined_call_operand.vmem [shape: f32[3,1,32], index: 7, kind: input, shape index: {}]   ;;  %s2501_s8 = inlined_call_operand.vmem [shape: bf16[3,96,32], index: 8, kind: input, shape index: {}]   ;;  %s2502_s9 = inlined_call_operand.vmem [shape: f32[3,1,32], index: 9, kind: input, shape index: {}]   ;;  %s2503_s10 = inlined_call_operand.vmem [shape: f32[3,1,32], index: 10, kind: input, shape index: {}]   ;;  %s2504_s11 = inlined_call_operand.vmem [shape: f32[3,1,32], index: 11, kind: input, shape index: {}]   ;;  %s2505_s12 = inlined_call_operand.vmem [shape: f32[3,1,32], index: 12, kind: input, shape index: {}]   ;;  %s2506_s13 = inlined_call_operand.vmem [shape: f32[3,1,1], index: 13, kind: input, shape index: {}]   ;;  %s2507_s14 = inlined_call_operand.vmem [shape: f32[2,15], index: 14, kind: input, shape index: {}]   ;;  %s2508_s15 = inlined_call_operand.vmem [shape: bf16[32,32], index: 15, kind: input, shape index: {}]   ;;  %s2509_s16 = inlined_call_operand.vmem [shape: f32[16,32], index: 16, kind: output, shape index: {0}]   ;;  %s2510_s17 = inlined_call_operand.vmem [shape: f32[2,4,8], index: 17, kind: output, shape index: {1}]   ;;  %s2511_s18 = inlined_call_operand.vmem [shape: f32[2,1,1], index: 18, kind: output, shape index: {2}]  }
   0x1   :  { %2513 = sst [smem:[#allocation5_spill]] %s2493_s0 }
   0x2   :  { %2514 = sst [smem:[#allocation6_spill]] %s2494_s1  ;;  %s2517_s29 = sld [smem:[#allocation5_spill]] }
   0x3   :  { %2515 = sst [smem:[#allocation7_spill]] %s2495_s2 }
   0x4   :  { %2516 = sst [smem:[#allocation8_spill]] %s2498_s5 }
   0x8   :  { %s24_s5 = sshll.u32 %s2517_s29, 4  ;;  %s25_s5 = int_to_ptr.vmem [resolvable:$true] %s24_s5 }
   0x9   :  { %s2014_s30 = scalar_lea.vmem %s25_s5, 16  ;;  %p2019_p1 = scmp.lt.s32.totalorder %s25_s5, %s25_s5 }
   0xa   :  { %p2015_p0 = scmp.ne.s32.totalorder %s25_s5, %s2014_s30  ;;  %p2020_p2 = scmp.lt.s32.totalorder %s2014_s30, %s2014_s30 }
   0xc   :  { %p2021_p3 = por %p2020_p2, %p2019_p1 }
   0xe   :  { %p2022_p4 = pnand %p2021_p3, %p2015_p0 }
  0x10   :  { %2025 = shalt.err (!%p2022_p4)  }
  0x11   :  { %s2036_s0 = smov [#allocation3]  }
  0x12   :  { %27 = dma.vmem_to_smem %s25_s5, 16, %s2036_s0, [#allocation2] }
  0x13   :  { %2030 = dma.done.wait [#allocation2], 16 }
  0x14   :  { %2031 = vsyncadd [#allocation2], 4294967280 }
  0x15   :  { %29 = sfence }
  0x16   :  { %s2144_s19 = smov 0  }
  0x17 LB: > { %s2150_s1 = sadd.s32 4294967295, %s2034_s19   ;;  %p1714_p5 = scmp.ge.s32.totalorder %s2034_s19, 1  ;;  %s2034_s19 = sphi %s2144_s19, %s35_s19  }
  0x18   : > { %p498_p6 = scmp.lt.s32.totalorder %s2034_s19, 3 }
  0x1a   : > { %p499_p7 = pnand %p1714_p5, %p498_p6 }
  0x1b   : > { %p555_p8 = scmp.lt.s32.totalorder (!%p499_p7), %s2150_s1, 1  ;;  %v572_v0 = vlaneseq (!%p499_p7)  ;;  %s2518_s21 = sld [smem:[#allocation7_spill]] (!%p499_p7)  ;;  %v2037_v2 = vmov (!%p499_p7), 0.0   ;;  %vm2039_vm1 = vmmov (!%p499_p7), 0   ;;  %vm595_vm3 = vcmask (!%p499_p7), 261120   ;;  %v1974_v54 = vld [vmem:[%s2501_s8 + $0x30] sm:$0xff] (!%p499_p7)  }
  0x1c   : > { %502 = sbr.rel (%p499_p7) target bundleno = 4198 (0x1066), region = 80  ;;  %1859 = vmatprep.subr.bf16.mxu0 (!%p499_p7), %v2037_v2  ;;  %1875 = vmatprep.subr.bf16.mxu1 (!%p499_p7), %v2037_v2  ;;  %s2519_s27 = sld [smem:[#allocation6_spill]] (!%p499_p7)  ;;  %vm597_vm4 = vcmask (!%p499_p7), 523264   ;;  %vm655_vm5 = vcmask (!%p499_p7), 785408   ;;  %v1718_v19 = vld [vmem:[%s2496_s3] ss:$0 sm:$0xff] (!%p499_p7) }
  0x1d   : > { %v2167_v4 = vshrl.u32 (!%p499_p7), %v572_v0, 7  ;;  %s2038_s0 = smov (!%p499_p7), 32   ;;  %1871 = vmatprep.mubr.msk.bf16.mxu0 (!%p499_p7), %vm2039_vm1, %v2037_v2  ;;  %1887 = vmatprep.mubr.msk.bf16.mxu1 (!%p499_p7), %vm2039_vm1, %v2037_v2  ;;  %s2040_s22 = smov (!%p499_p7), 64   ;;  %v1742_v33 = vld [vmem:[%s2499_s6 + $0x1] ss:$0 sm:$0xff] (!%p499_p7)  ;;  %v1976_v56 = vld [vmem:[%s2501_s8 + $0x38] sm:$0xff] (!%p499_p7)  }
  0x1e   : > { %s2041_s30 = smov (!%p499_p7), 96   ;;  %v1743_v36 = vld [vmem:[%s2500_s7 + $0x1] ss:$0 sm:$0xff] (!%p499_p7)  ;;  %v1977_v57 = vld [vmem:[%s2501_s8 + $0x8] sm:$0xff] (!%p499_p7)   ;;  %v1726_v59 = vld [vmem:[%s2499_s6] ss:$0 sm:$0xff] (!%p499_p7) }
  0x1f   : > { %vm578_vm0 = vcmp.le.s32.totalorder (!%p499_p7), %v2167_v4, 6  ;;  %vm577_vm2 = vcmp.ge.s32.totalorder (!%p499_p7), %v2167_v4, 1  ;;  %v1975_v55 = vld [vmem:[%s2501_s8] sm:$0xff] (!%p499_p7)   ;;  %v1979_v61 = vld [vmem:[%s2501_s8 + $0x10] sm:$0xff] (!%p499_p7)   ;;  %s574_s25 = sld [smem:[#allocation3 + %s2150_s1]] (!%p499_p7)  ;;  %vm1117_vm7 = vcmask (!%p499_p7), 121856  }
  0x20   : > { %1876 = vmatpush3.bf16.msra.mxu1 (!%p499_p7), %v1975_v55  ;;  %v1978_v60 = vld [vmem:[%s2501_s8 + $0x40] sm:$0xff] (!%p499_p7)   ;;  %s2522_s20 = sld [smem:[#allocation8_spill]] (!%p499_p7)  ;;  %s2043_s2 = smov (!%p499_p7), 1   ;;  %vm1555_vm13 = vcmask (!%p499_p7), 7168   ;;  %vm1557_vm14 = vcmask (!%p499_p7), 15360   ;;  %vm1559_vm15 = vcmask (!%p499_p7), 23552  }
  0x21   : > { %v1968_v1 = vld [vmem:[%s2518_s21] sm:$0xff] (!%p499_p7)   ;;  %v1969_v3 = vld [vmem:[%s2518_s21 + $0x8] sm:$0xff] (!%p499_p7)   ;;  %v1970_v5 = vld [vmem:[%s2518_s21 + $0x10] sm:$0xff] (!%p499_p7)   ;;  %1877 = vmatprep.subr.bf16.mxu1 (!%p499_p7), %v2037_v2  ;;  %s2044_s26 = smov (!%p499_p7), 2  }
  0x22   : > { %1860 = vmatpush3.bf16.msra.mxu0 (!%p499_p7), %v1968_v1  ;;  %v1971_v9 = vld [vmem:[%s2518_s21 + $0x18] sm:$0xff] (!%p499_p7)   ;;  %v1972_v10 = vld [vmem:[%s2518_s21 + $0x20] sm:$0xff] (!%p499_p7)   ;;  %v1973_v11 = vld [vmem:[%s2518_s21 + $0x28] sm:$0xff] (!%p499_p7)  }
  0x23   : > { %s2164_s23 = scalar_select %p555_p8, %s2150_s1, 1  ;;  %1861 = vmatprep.subr.bf16.mxu0 %v2037_v2  ;;  %v1727_v63 = vld [vmem:[%s2500_s7] ss:$0 sm:$0xff] }
  0x24   : > { %1878 = vmatpush3.bf16.msra.mxu1 %v1977_v57 }
  0x25   : > { %s1715_s24 = sshll.u32 %s2164_s23, 3  ;;  %1879 = vmatprep.subr.bf16.mxu1 %v2037_v2  ;;  %s569_s5 = scalar_lea.vmem %s2511_s18, %s2164_s23 }
  0x26   : > { %s558_s28 = scalar_lea.vmem %s2519_s27, %s1715_s24  ;;  %1862 = vmatpush3.bf16.msra.mxu0 %v1969_v3  ;;  %v1980_v3 = vld [vmem:[%s2501_s8 + $0x48] sm:$0xff]   ;;  %s562_s1 = scalar_lea.vmem %s2509_s16, %s1715_s24 }
  0x27   : > { %v2180_v6 = vld [vmem:[%s558_s28] sm:$0xff]  ;;  %1863 = vmatprep.subr.bf16.mxu0 %v2037_v2  ;;  %s2045_s27 = smov 3  }
  0x28   : > { %588 = vrot.lane.b32.xlu0 %v2180_v6, %s2038_s0  ;;  %v583_v7 = vrot.slane %v2180_v6, 1  ;;  %v579_v12 = vrot.slane %v2180_v6, 7  ;;  %1880 = vmatpush3.bf16.msra.mxu1 %v1979_v61 }
  0x29   : > { %1881 = vmatprep.subr.bf16.mxu1 %v2037_v2 }
  0x2a   : > { %v586_v8 = vsel %vm578_vm0, %v583_v7, 0.0  ;;  %1864 = vmatpush3.bf16.msra.mxu0 %v1970_v5  ;;  %v582_v14 = vsel %vm577_vm2, %v579_v12, 0.0  ;;  %v1981_v5 = vld [vmem:[%s2501_s8 + $0x18] sm:$0xff]  }
  0x2b   : > { %1865 = vmatprep.subr.bf16.mxu0 %v2037_v2 }
  0x2c   : > { %592 = vrot.lane.b32.xlu0 %v586_v8, %s2040_s22  ;;  %1882 = vmatpush3.bf16.msra.mxu1 %v1981_v5  ;;  %v1982_v8 = vld [vmem:[%s2501_s8 + $0x50] sm:$0xff]  }
  0x2d   : > { %1883 = vmatprep.subr.bf16.mxu1 %v2037_v2 }
  0x2e   : > { %1866 = vmatpush3.bf16.msra.mxu0 %v1971_v9  ;;  %v1983_v9 = vld [vmem:[%s2501_s8 + $0x20] sm:$0xff]  }
  0x2f   : > { %1867 = vmatprep.subr.bf16.mxu0 %v2037_v2 }
  0x30   : > { %1884 = vmatpush3.bf16.msra.mxu1 %v1983_v9  ;;  %v1736_v9 = vld [vmem:[%s2503_s10] ss:$0 sm:$0xff] }
  0x31   : > { %1885 = vmatprep.subr.bf16.mxu1 %v2037_v2 }
  0x32   : > { %1868 = vmatpush3.bf16.msra.mxu0 %v1972_v10  ;;  %v1984_v10 = vld [vmem:[%s2501_s8 + $0x58] sm:$0xff]  }
  0x33   : > { %1869 = vmatprep.subr.bf16.mxu0 %v2037_v2 }
  0x36   : > { %1870 = vmatpush3.bf16.msra.mxu0 %v1973_v11  ;;  %v1985_v11 = vld [vmem:[%s2501_s8 + $0x28] sm:$0xff]  }
  0x37   : > { %1891 = vmatprep.subr.bf16.mxu0 %v2037_v2  ;;  %1886 = vmatpush3.bf16.msra.mxu1 %v1985_v11 }
  0x38   : > { %1907 = vmatprep.subr.bf16.mxu1 %v2037_v2 }
  0x9a   : > { %v589_v13 = vpop.permute.xlu0 %588 }
  0x9b   : > { %v596_v15 = vsel %vm595_vm3, %v582_v14, %v589_v13 }
  0x9e   : > { %v593_v16 = vpop.permute.xlu0 %592 }
  0x9f   : > { %v598_v17 = vsel %vm597_vm4, %v596_v15, %v593_v16 }
  0xa0   : > { %v599_v18 = vpack.c.bf16 %v598_v17, %v598_v17 }
  0xa2   : > { %1872 = vmatmul.mubr.msk.bf16.vlgmr.msra.gmra.mrb[0].mxu0 %vm655_vm5, %v599_v18 }
  0xa3   : > { %1903 = vmatprep.mubr.msk.bf16.mxu0 %vm2039_vm1, %v2037_v2  ;;  %1892 = vmatpush3.bf16.msra.mxu0 %v1974_v54 }
  0xa4   : > { %1893 = vmatprep.subr.bf16.mxu0 %v2037_v2 }
  0xa7   : > { %1894 = vmatpush3.bf16.msra.mxu0 %v1976_v56 }
  0xa8   : > { %1895 = vmatprep.subr.bf16.mxu0 %v2037_v2 }
  0xab   : > { %1896 = vmatpush3.bf16.msra.mxu0 %v1978_v60 }
  0xac   : > { %1897 = vmatprep.subr.bf16.mxu0 %v2037_v2 }
  0xaf   : > { %1898 = vmatpush3.bf16.msra.mxu0 %v1980_v3  ;;  %v1768_v3 = vld [vmem:[%s2504_s11 + $0x1] ss:$0 sm:$0xff] }
  0xb0   : > { %1899 = vmatprep.subr.bf16.mxu0 %v2037_v2 }
  0xb3   : > { %1900 = vmatpush3.bf16.msra.mxu0 %v1982_v8  ;;  %v1770_v8 = vld [vmem:[%s2505_s12 + $0x1] ss:$0 sm:$0xff] }
  0xb4   : > { %1901 = vmatprep.subr.bf16.mxu0 %v2037_v2 }
  0xb7   : > { %1902 = vmatpush3.bf16.msra.mxu0 %v1984_v10 }
  0xb8   : > { %1931 = vmatprep.subr.bf16.mxu0 %v2037_v2 }
 0x175   : > { %v693_v20 = vpop.f32.mrb[0].mxu0 }
 0x176   : > { %v694_v21 = vadd.f32 %v1718_v19, %v693_v20  ;;  %v1873_v22 = vpop.f32.mrb[1].mxu0 }
 0x177   : > { %v696_v23 = vpop.f32.mrb[2].mxu0 }
 0x178   : > { %v699_v24 = vmax.f32 %v694_v21, 0.0  ;;  %v1874_v25 = vpop.f32.mrb[3].mxu0 }
 0x17a   : > { %898 = vrot.lane.b32.xlu1 %v699_v24, %s2041_s30  ;;  %v702_v32 = vsel %vm595_vm3, %v699_v24, 0.0 }
 0x1ec   : > { %v899_v26 = vpop.permute.xlu1 %898 }
 0x1ed   : > { %v901_v27 = vsel %vm595_vm3, %v899_v26, 0.0 }
 0x1ee   : > { %902 = vadd.xlane.f32.xlu1 %v901_v27 }
 0x27b   : > { %v903_v28 = vpop.xlane.xlu1 %902 }
 0x27c   : > { %v904_v29 = vmul.f32 0.03125, %v903_v28 }
 0x27e   : > { %v905_v30 = vsub.f32 %v699_v24, %v904_v29 }
 0x280   : > { %v906_v31 = vmul.f32 %v905_v30, %v905_v30 }
 0x282   : > { %908 = vrot.lane.b32.xlu0 %v906_v31, %s2041_s30 }
 0x2a1   : > { %703 = vadd.xlane.f32.xlu0 %v702_v32 }
 0x2b7   : > { %923 = vrot.lane.b32.xlu0 %v1742_v33, %s2038_s0 }
 0x2f4   : > { %v909_v34 = vpop.permute.xlu0 %908 }
 0x2f5   : > { %v911_v35 = vsel %vm595_vm3, %v909_v34, 0.0 }
 0x2f6   : > { %912 = vadd.xlane.f32.xlu1 %v911_v35  ;;  %v1728_v35 = vld [vmem:[%s2502_s9] ss:$0 sm:$0xff] }
 0x307   : > { %932 = vrot.lane.b32.xlu1 %v1743_v36, %s2038_s0 }
 0x32e   : > { %v704_v37 = vpop.xlane.xlu0 %703 }
 0x32f   : > { %v706_v38 = vmul.f32 0.03125, %v704_v37 }
 0x331   : > { %v707_v39 = vsub.f32 %v699_v24, %v706_v38 }
 0x332   : > { %v924_v46 = vpop.permute.xlu0 %923 }
 0x333   : > { %v708_v40 = vmul.f32 %v707_v39, %v707_v39 }
 0x335   : > { %v709_v41 = vsel %vm595_vm3, %v708_v40, 0.0 }
 0x336   : > { %710 = vadd.xlane.f32.xlu1 %v709_v41 }
 0x383   : > { %v913_v42 = vpop.xlane.xlu1 %912 }
 0x384   : > { %v914_v43 = vmul.f32 0.03125, %v913_v42 }
 0x386   : > { %v915_v44 = vadd.f32 1e-05, %v914_v43 }
 0x387   : > { %v933_v48 = vpop.permute.xlu1 %932 }
 0x388   : > { %2000 = vrsqrt.f32 %v915_v44 }
 0x392   : > { %v2001_v45 = vpop.eup %2000 }
 0x393   : > { %v917_v47 = vmul.f32 %v2001_v45, %v905_v30  ;;  %v1757_v30 = vld [vmem:[%s2502_s9 + $0x1] ss:$0 sm:$0xff] }
 0x395   : > { %v926_v49 = vmul.f32 %v924_v46, %v917_v47 }
 0x397   : > { %v935_v50 = vadd.f32 %v933_v48, %v926_v49 }
 0x399   : > { %937 = vrot.lane.b32.xlu0 %v935_v50, %s2041_s30 }
 0x3c3   : > { %v711_v51 = vpop.xlane.xlu1 %710 }
 0x3c4   : > { %v712_v52 = vmul.f32 0.03125, %v711_v51 }
 0x3c6   : > { %v713_v53 = vadd.f32 1e-05, %v712_v52 }
 0x3c8   : > { %2002 = vrsqrt.f32 %v713_v53 }
 0x3d2   : > { %v2003_v58 = vpop.eup %2002 }
 0x3d3   : > { %v715_v62 = vmul.f32 %v2003_v58, %v707_v39 }
 0x3d5   : > { %v722_v1 = vmul.f32 %v1726_v59, %v715_v62 }
 0x3d7   : > { %v729_v7 = vadd.f32 %v1727_v63, %v722_v1  ;;  %v1767_v63 = vld [vmem:[%s2503_s10 + $0x1] ss:$0 sm:$0xff] }
 0x3d9   : > { %735 = vrot.lane.b32.xlu0 %v729_v7, %s2038_s0  ;;  %v732_v15 = vrot.slane %v729_v7, 1  ;;  %v730_v20 = vrot.slane %v729_v7, 7 }
 0x3db   : > { %v733_v16 = vsel %vm578_vm0, %v732_v15, 0.0  ;;  %v731_v25 = vsel %vm577_vm2, %v730_v20, 0.0  ;;  %v1738_v15 = vld [vmem:[%s2505_s12] ss:$0 sm:$0xff]  ;;  %v2042_v20 = vmov 0  }
 0x3dc   : > { %1966 = vset.pattern.permute.xlu1 %v2042_v20  ;;  %1967 = vset.pattern.permute.xlu0 %v2042_v20 }
 0x40b   : > { %v938_v12 = vpop.permute.xlu0 %937 }
 0x40c   : > { %v942_v13 = vrot.slane %v938_v12, 1  ;;  %v940_v17 = vrot.slane %v938_v12, 7  ;;  %v1737_v12 = vld [vmem:[%s2504_s11] ss:$0 sm:$0xff] }
 0x40e   : > { %v943_v14 = vsel %vm578_vm0, %v942_v13, 0.0  ;;  %v941_v19 = vsel %vm577_vm2, %v940_v17, 0.0 }
 0x40f   : > { %945 = vrot.lane.b32.xlu0 %v943_v14, %s2040_s22  ;;  %v948_v21 = vsel %vm595_vm3, %v941_v19, %v935_v50 }
 0x413   : > { %739 = vrot.lane.b32.xlu0 %v733_v16, %s2040_s22 }
 0x44b   : > { %v736_v18 = vpop.permute.xlu0 %735 }
 0x44c   : > { %v742_v26 = vsel %vm595_vm3, %v731_v25, %v736_v18 }
 0x481   : > { %v946_v22 = vpop.permute.xlu0 %945 }
 0x482   : > { %v949_v23 = vsel %vm597_vm4, %v948_v21, %v946_v22  ;;  %v575_v21 = vstv %s574_s25  ;;  %v1772_v22 = vld [vmem:[%s2506_s13 + $0x1] ss:$0 sm:$0xff] }
 0x483   : > { %v950_v24 = vpack.c.bf16 %v949_v23, %v949_v23  ;;  %vm2343_vm6 = vcmp.ge.s32.totalorder %v2167_v4, %v575_v21 }
 0x485   : > { %1904 = vmatmul.mubr.msk.bf16.vlgmr.msra.gmra.mrb[4].mxu0 %vm655_vm5, %v950_v24  ;;  %v740_v27 = vpop.permute.xlu0 %739 }
 0x486   : > { %v743_v28 = vsel %vm597_vm4, %v742_v26, %v740_v27  ;;  %1943 = vmatprep.mubr.msk.bf16.mxu0 %vm2039_vm1, %v2037_v2  ;;  %v1739_v26 = vld [vmem:[%s2506_s13] ss:$0 sm:$0xff] }
 0x487   : > { %v744_v29 = vpack.c.bf16 %v743_v28, %v743_v28 }
 0x489   : > { %1888 = vmatmul.mubr.msk.bf16.vlgmr.msra.gmra.mrb[0].mxu1 %vm655_vm5, %v744_v29 }
 0x48a   : > { %1911 = vmatprep.mubr.msk.bf16.mxu1 %vm2039_vm1, %v2037_v2 }
 0x558   : > { %v1045_v31 = vpop.f32.mrb[4].mxu0 }
 0x559   : > { %v1046_v32 = vadd.f32 %v1757_v30, %v1045_v31  ;;  %v1905_v33 = vpop.f32.mrb[5].mxu0  ;;  %v1138_v31 = vsub.s32 1, %v2167_v4 }
 0x55a   : > { %v1048_v34 = vpop.f32.mrb[6].mxu0 }
 0x55b   : > { %v1051_v36 = vmax.f32 %v1046_v32, 0.0  ;;  %v1906_v37 = vpop.f32.mrb[7].mxu0  ;;  %v1105_v32 = vld [vmem:[%s2507_s14] sm:$0x3]  ;;  %v1113_v34 = vsub.s32 0, %v2167_v4 }
 0x55c   : > { %v837_v38 = vpop.f32.mrb[0].mxu1  ;;  %v1139_v33 = vrot.slane %v1105_v32, %v1138_v31 }
 0x55d   : > { %v838_v39 = vadd.f32 %v1728_v35, %v837_v38  ;;  %v1889_v40 = vpop.f32.mrb[1].mxu1  ;;  %v1056_v41 = vsel %vm595_vm3, %v1051_v36, 0.0 }
 0x55e   : > { %v840_v42 = vpop.f32.mrb[2].mxu1  ;;  %1057 = vadd.xlane.f32.xlu0 %v1056_v41 }
 0x55f   : > { %v843_v43 = vmax.f32 %v838_v39, 0.0  ;;  %v1890_v44 = vpop.f32.mrb[3].mxu1 }
 0x561   : > { %v846_v45 = vsel %vm595_vm3, %v843_v43, 0.0 }
 0x562   : > { %847 = vadd.xlane.f32.xlu1 %v846_v45 }
 0x5eb   : > { %v1058_v46 = vpop.xlane.xlu0 %1057 }
 0x5ec   : > { %v1059_v47 = vmul.f32 0.03125, %v1058_v46 }
 0x5ee   : > { %v1060_v48 = vsub.f32 %v1051_v36, %v1059_v47  ;;  %v1114_v36 = vrot.slane %v1105_v32, %v1113_v34 }
 0x5ef   : > { %v848_v49 = vpop.xlane.xlu1 %847 }
 0x5f0   : > { %v849_v50 = vmul.f32 0.03125, %v848_v49  ;;  %v1061_v51 = vmul.f32 %v1060_v48, %v1060_v48 }
 0x5f2   : > { %v850_v52 = vsub.f32 %v843_v43, %v849_v50  ;;  %v1062_v53 = vsel %vm595_vm3, %v1061_v51, 0.0  ;;  %v1986_v50 = vld [vmem:[%s2508_s15] sm:$0xff]   ;;  %v1987_v51 = vld [vmem:[%s2508_s15 + $0x8] sm:$0xff]  }
 0x5f3   : > { %1063 = vadd.xlane.f32.xlu1 %v1062_v53  ;;  %1908 = vmatpush3.bf16.msra.mxu1 %v1986_v50  ;;  %v1999_v50 = vld [vmem:[%s2501_s8 + $0x88] sm:$0xff]  }
 0x5f4   : > { %v851_v54 = vmul.f32 %v850_v52, %v850_v52  ;;  %1909 = vmatprep.subr.bf16.mxu1 %v2037_v2 }
 0x5f6   : > { %v852_v55 = vsel %vm595_vm3, %v851_v54, 0.0 }
 0x5f7   : > { %853 = vadd.xlane.f32.xlu1 %v852_v55  ;;  %1910 = vmatpush3.bf16.msra.mxu1 %v1987_v51 }
 0x5f8   : > { %1915 = vmatprep.subr.bf16.mxu1 %v2037_v2 }
 0x680   : > { %v1064_v56 = vpop.xlane.xlu1 %1063 }
 0x681   : > { %v1065_v57 = vmul.f32 0.03125, %v1064_v56 }
 0x683   : > { %v1066_v58 = vadd.f32 1e-05, %v1065_v57 }
 0x684   : > { %v854_v59 = vpop.xlane.xlu1 %853 }
 0x685   : > { %2004 = vrsqrt.f32 %v1066_v58  ;;  %v855_v60 = vmul.f32 0.03125, %v854_v59 }
 0x687   : > { %v856_v61 = vadd.f32 1e-05, %v855_v60 }
 0x689   : > { %2006 = vrsqrt.f32 %v856_v61 }
 0x68f   : > { %v2005_v62 = vpop.eup %2004 }
 0x690   : > { %v1068_v1 = vmul.f32 %v2005_v62, %v1060_v48  ;;  %v1156_v62 = vand.u32 127, %v572_v0  ;;  %v1989_v0 = vld [vmem:[%s2497_s4 + $0x8] sm:$0xff]  }
 0x692   : > { %v1075_v5 = vmul.f32 %v1767_v63, %v1068_v1 }
 0x693   : > { %v2007_v7 = vpop.eup %2006 }
 0x694   : > { %v1082_v10 = vadd.f32 %v1768_v3, %v1075_v5  ;;  %v858_v11 = vmul.f32 %v2007_v7, %v850_v52 }
 0x696   : > { %v1091_v13 = vmul.f32 %v1770_v8, %v1082_v10  ;;  %v865_v14 = vmul.f32 %v1736_v9, %v858_v11  ;;  %v1988_v8 = vld [vmem:[%s2497_s4] sm:$0xff]   ;;  %v1990_v9 = vld [vmem:[%s2497_s4 + $0x10] sm:$0xff]   ;;  %v1991_v10 = vld [vmem:[%s2497_s4 + $0x18] sm:$0xff]  }
 0x697   : > { %v1992_v11 = vld [vmem:[%s2497_s4 + $0x20] sm:$0xff]  }
 0x698   : > { %v1092_v16 = vsel %vm595_vm3, %v1091_v13, 0.0  ;;  %v872_v17 = vadd.f32 %v1737_v12, %v865_v14  ;;  %v1993_v12 = vld [vmem:[%s2497_s4 + $0x28] sm:$0xff]  }
 0x699   : > { %1093 = vadd.xlane.f32.xlu1 %v1092_v16 }
 0x69a   : > { %v880_v18 = vmul.f32 %v1738_v15, %v872_v17 }
 0x69c   : > { %v881_v19 = vsel %vm595_vm3, %v880_v18, 0.0 }
 0x69d   : > { %882 = vadd.xlane.f32.xlu0 %v881_v19 }
 0x726   : > { %v1094_v23 = vpop.xlane.xlu1 %1093 }
 0x727   : > { %v1103_v25 = vadd.f32 %v1772_v22, %v1094_v23 }
 0x729   : > { %v2352_v27 = vsel %vm2343_vm6, 0.0, %v1103_v25 }
 0x72a   : > { %v883_v28 = vpop.xlane.xlu0 %882  ;;  %1133 = vperm.xlu1 %1966, %v2352_v27  }
 0x72b   : > { %v891_v29 = vadd.f32 %v1739_v26, %v883_v28  ;;  %v1777_v28 = vld [vmem:[%s2522_s20] ss:$0 sm:$0xff] }
 0x72d   : > { %v2357_v30 = vsel %vm2343_vm6, 0.0, %v891_v29 }
 0x72e   : > { %1108 = vperm.xlu0 %1967, %v2357_v30  }
 0x7a9   : > { %v1134_v35 = vpop.permute.xlu1 %1133 }
 0x7aa   : > { %vm1140_vm8 = vcmp.gt.f32.partialorder %v1134_v35, %v1139_v33 }
 0x7ab   : > { %v1141_v37 = vsel %vm1140_vm8, 1, %v2042_v20 }
 0x7ac   : > { %v1142_v38 = vsel %vm1117_vm7, %v1141_v37, 0 }
 0x7ad   : > { %v1109_v39 = vpop.permute.xlu0 %1108  ;;  %v1144_v40 = vshrl.u32 %v1142_v38, 16  ;;  %v1143_v43 = vand.u32 65535, %v1142_v38 }
 0x7ae   : > { %vm1115_vm9 = vcmp.gt.f32.partialorder %v1109_v39, %v1114_v36 }
 0x7af   : > { %v1116_v41 = vsel %vm1115_vm9, 1, %v2042_v20  ;;  %v1146_v42 = vcvt.s32.f32 %v1144_v40  ;;  %v1145_v47 = vcvt.s32.f32 %v1143_v43  ;;  %v1995_v43 = vld [vmem:[%s2501_s8 + $0x68] sm:$0xff]  }
 0x7b0   : > { %v1118_v44 = vsel %vm1117_vm7, %v1116_v41, 0 }
 0x7b1   : > { %1149 = vadd.xlane.f32.xlu1 %v1146_v42  ;;  %v1120_v45 = vshrl.u32 %v1118_v44, 16  ;;  %v1119_v48 = vand.u32 65535, %v1118_v44  ;;  %v1994_v42 = vld [vmem:[%s2501_s8 + $0x60] sm:$0xff]   ;;  %v1996_v44 = vld [vmem:[%s2501_s8 + $0x70] sm:$0xff]  }
 0x7b2   : > { %1932 = vmatpush3.bf16.msra.mxu0 %v1994_v42 }
 0x7b3   : > { %v1122_v46 = vcvt.s32.f32 %v1120_v45  ;;  %v1121_v49 = vcvt.s32.f32 %v1119_v48  ;;  %1933 = vmatprep.subr.bf16.mxu0 %v2037_v2  ;;  %v1997_v45 = vld [vmem:[%s2501_s8 + $0x78] sm:$0xff]  }
 0x7b5   : > { %1125 = vadd.xlane.f32.xlu0 %v1122_v46  ;;  %1147 = vadd.xlane.f32.xlu1 %v1145_v47  ;;  %v1998_v46 = vld [vmem:[%s2501_s8 + $0x80] sm:$0xff]  }
 0x7b6   : > { %1934 = vmatpush3.bf16.msra.mxu0 %v1995_v43 }
 0x7b7   : > { %1935 = vmatprep.subr.bf16.mxu0 %v2037_v2 }
 0x7b9   : > { %1123 = vadd.xlane.f32.xlu1 %v1121_v49 }
 0x7ba   : > { %1936 = vmatpush3.bf16.msra.mxu0 %v1996_v44 }
 0x7bb   : > { %1937 = vmatprep.subr.bf16.mxu0 %v2037_v2 }
 0x7be   : > { %1938 = vmatpush3.bf16.msra.mxu0 %v1997_v45 }
 0x7bf   : > { %1939 = vmatprep.subr.bf16.mxu0 %v2037_v2 }
 0x7c2   : > { %1940 = vmatpush3.bf16.msra.mxu0 %v1998_v46 }
 0x7c3   : > { %1941 = vmatprep.subr.bf16.mxu0 %v2037_v2 }
 0x7c6   : > { %1942 = vmatpush3.bf16.msra.mxu0 %v1999_v50 }
 0x83e   : > { %v1150_v52 = vpop.xlane.xlu1 %1149 }
 0x83f   : > { %v1152_v53 = vcvt.f32.s32 %v1150_v52  ;;  %v1787_v52 = vld [vmem:[%s2499_s6 + $0x2] ss:$0 sm:$0xff] }
 0x841   : > { %v1153_v56 = vshll.u32 %v1152_v53, 16 }
 0x842   : > { %v1126_v54 = vpop.xlane.xlu0 %1125  ;;  %v1148_v55 = vpop.xlane.xlu1 %1147 }
 0x843   : > { %v1128_v57 = vcvt.f32.s32 %v1126_v54  ;;  %v1151_v58 = vcvt.f32.s32 %v1148_v55  ;;  %v1788_v54 = vld [vmem:[%s2500_s7 + $0x2] ss:$0 sm:$0xff] }
 0x845   : > { %v1154_v59 = vadd.s32 %v1153_v56, %v1151_v58  ;;  %v1129_v61 = vshll.u32 %v1128_v57, 16 }
 0x846   : > { %v1124_v60 = vpop.xlane.xlu1 %1123 }
 0x847   : > { %v1158_v63 = vadd.s32 16, %v1154_v59  ;;  %v1127_v1 = vcvt.f32.s32 %v1124_v60 }
 0x849   : > { %v1130_v3 = vadd.s32 %v1129_v61, %v1127_v1  ;;  %vm1159_vm10 = vcmp.eq.s32.totalorder %v1156_v62, %v1158_v63 }
 0x84b   : > { %vm1157_vm11 = vcmp.eq.s32.totalorder %v1156_v62, %v1130_v3  ;;  %v1802_v3 = vld [vmem:[%s2502_s9 + $0x2] ss:$0 sm:$0xff] }
 0x84c   : > { %vm1160_vm12 = vmor %vm1157_vm11, %vm1159_vm10 }
 0x84d   : > { %v1773_v5 = vsel %vm1160_vm12, 1.0, %v2037_v2 }
 0x84e   : > { %v1163_v7 = vpack.c.bf16 %v1773_v5, %v1773_v5 }
 0x850   : > { %1912 = vmatmul.mubr.msk.bf16.vlgmr.msra.gmra.mrb[4].mxu1 %vm595_vm3, %v1163_v7 }
 0x851   : > { %1927 = vmatprep.mubr.msk.bf16.mxu1 %vm2039_vm1, %v2037_v2  ;;  %1916 = vmatpush3.bf16.msra.mxu1 %v1988_v8  ;;  %vm1595_vm1 = vcmask 60419  }
 0x852   : > { %1917 = vmatprep.subr.bf16.mxu1 %v2037_v2 }
 0x855   : > { %1918 = vmatpush3.bf16.msra.mxu1 %v1989_v0 }
 0x856   : > { %1919 = vmatprep.subr.bf16.mxu1 %v2037_v2 }
 0x859   : > { %1920 = vmatpush3.bf16.msra.mxu1 %v1990_v9 }
 0x85a   : > { %1921 = vmatprep.subr.bf16.mxu1 %v2037_v2 }
 0x85d   : > { %1922 = vmatpush3.bf16.msra.mxu1 %v1991_v10 }
 0x85e   : > { %1923 = vmatprep.subr.bf16.mxu1 %v2037_v2 }
 0x861   : > { %1924 = vmatpush3.bf16.msra.mxu1 %v1992_v11 }
 0x862   : > { %1925 = vmatprep.subr.bf16.mxu1 %v2037_v2 }
 0x865   : > { %1926 = vmatpush3.bf16.msra.mxu1 %v1993_v12 }
 0x923   : > { %v1217_v13 = vpop.f32.mrb[4].mxu1 }
 0x924   : > { %v1223_v14 = vadd.f32 %v1217_v13, %v2180_v6  ;;  %v1913_v15 = vpop.f32.mrb[5].mxu1 }
 0x925   : > { %v1220_v16 = vpop.f32.mrb[6].mxu1 }
 0x926   : > { %1224 = vst.msk [vmem:[%s562_s1] sm:$0xff] %vm595_vm3, %v1223_v14  ;;  %1230 = vrot.lane.b32.xlu1 %v1223_v14, %s2038_s0  ;;  %v1914_v17 = vpop.f32.mrb[7].mxu1  ;;  %v1227_v18 = vrot.slane %v1223_v14, 1  ;;  %v1225_v20 = vrot.slane %v1223_v14, 7 }
 0x928   : > { %v1228_v19 = vsel %vm578_vm0, %v1227_v18, 0.0  ;;  %v1226_v22 = vsel %vm577_vm2, %v1225_v20, 0.0  ;;  %v1812_v20 = vld [vmem:[%s2503_s10 + $0x2] ss:$0 sm:$0xff] }
 0x929   : > { %1234 = vrot.lane.b32.xlu0 %v1228_v19, %s2040_s22 }
 0x998   : > { %v1231_v21 = vpop.permute.xlu1 %1230 }
 0x999   : > { %v1237_v6 = vsel %vm595_vm3, %v1226_v22, %v1231_v21  ;;  %v1813_v22 = vld [vmem:[%s2504_s11 + $0x2] ss:$0 sm:$0xff] }
 0x99b   : > { %v1235_v23 = vpop.permute.xlu0 %1234 }
 0x99c   : > { %v1238_v25 = vsel %vm597_vm4, %v1237_v6, %v1235_v23  ;;  %v1815_v23 = vld [vmem:[%s2505_s12 + $0x2] ss:$0 sm:$0xff] }
 0x99d   : > { %v1239_v26 = vpack.c.bf16 %v1238_v25, %v1238_v25 }
 0x99f   : > { %1928 = vmatmul.mubr.msk.bf16.vlgmr.msra.gmra.mrb[8].mxu1 %vm655_vm5, %v1239_v26 }
 0xa72   : > { %v1332_v29 = vpop.f32.mrb[8].mxu1 }
 0xa73   : > { %v1333_v31 = vadd.f32 %v1777_v28, %v1332_v29  ;;  %v1929_v32 = vpop.f32.mrb[9].mxu1  ;;  %v1817_v29 = vld [vmem:[%s2506_s13 + $0x2] ss:$0 sm:$0xff] }
 0xa74   : > { %v1335_v33 = vpop.f32.mrb[10].mxu1 }
 0xa75   : > { %v1338_v34 = vmax.f32 %v1333_v31, 0.0  ;;  %v1930_v35 = vpop.f32.mrb[11].mxu1 }
 0xa77   : > { %v1343_v36 = vsel %vm595_vm3, %v1338_v34, 0.0 }
 0xa78   : > { %1344 = vadd.xlane.f32.xlu1 %v1343_v36 }
 0xb05   : > { %v1345_v37 = vpop.xlane.xlu1 %1344 }
 0xb06   : > { %v1346_v38 = vmul.f32 0.03125, %v1345_v37 }
 0xb08   : > { %v1347_v39 = vsub.f32 %v1338_v34, %v1346_v38 }
 0xb0a   : > { %v1348_v40 = vmul.f32 %v1347_v39, %v1347_v39 }
 0xb0c   : > { %v1349_v41 = vsel %vm595_vm3, %v1348_v40, 0.0 }
 0xb0d   : > { %1350 = vadd.xlane.f32.xlu0 %v1349_v41 }
 0xb9a   : > { %v1351_v47 = vpop.xlane.xlu0 %1350 }
 0xb9b   : > { %v1352_v48 = vmul.f32 0.03125, %v1351_v47 }
 0xb9d   : > { %v1353_v49 = vadd.f32 1e-05, %v1352_v48 }
 0xb9f   : > { %2008 = vrsqrt.f32 %v1353_v49 }
 0xba9   : > { %v2009_v51 = vpop.eup %2008 }
 0xbaa   : > { %v1355_v53 = vmul.f32 %v2009_v51, %v1347_v39 }
 0xbac   : > { %v1362_v2 = vmul.f32 %v1787_v52, %v1355_v53 }
 0xbae   : > { %v1369_v55 = vadd.f32 %v1788_v54, %v1362_v2 }
 0xbb0   : > { %1375 = vrot.lane.b32.xlu1 %v1369_v55, %s2038_s0  ;;  %v1372_v56 = vrot.slane %v1369_v55, 1  ;;  %v1370_v58 = vrot.slane %v1369_v55, 7  ;;  %s1717_s0 = sshll.u32 %s2164_s23, 2 }
 0xbb1   : > { %s566_s29 = scalar_lea.vmem %s2510_s17, %s1717_s0 }
 0xbb2   : > { %v1373_v57 = vsel %vm578_vm0, %v1372_v56, 0.0  ;;  %v1371_v60 = vsel %vm577_vm2, %v1370_v58, 0.0  ;;  %vm1593_vm0 = vcmask 60416   ;;  %vm1599_vm2 = vcmask 3075  }
 0xbb3   : > { %1379 = vrot.lane.b32.xlu0 %v1373_v57, %s2040_s22 }
 0xc22   : > { %v1376_v59 = vpop.permute.xlu1 %1375 }
 0xc23   : > { %v1382_v61 = vsel %vm595_vm3, %v1371_v60, %v1376_v59 }
 0xc25   : > { %v1380_v62 = vpop.permute.xlu0 %1379 }
 0xc26   : > { %v1383_v63 = vsel %vm597_vm4, %v1382_v61, %v1380_v62 }
 0xc27   : > { %v1384_v1 = vpack.c.bf16 %v1383_v63, %v1383_v63 }
 0xc29   : > { %1944 = vmatmul.mubr.msk.bf16.vlgmr.msra.gmra.mrb[8].mxu0 %vm655_vm5, %v1384_v1 }
 0xcfc   : > { %v1479_v5 = vpop.f32.mrb[8].mxu0 }
 0xcfd   : > { %v1480_v7 = vadd.f32 %v1802_v3, %v1479_v5  ;;  %v1945_v8 = vpop.f32.mrb[9].mxu0 }
 0xcfe   : > { %v1482_v0 = vpop.f32.mrb[10].mxu0 }
 0xcff   : > { %v1485_v9 = vmax.f32 %v1480_v7, 0.0  ;;  %v1946_v10 = vpop.f32.mrb[11].mxu0 }
 0xd01   : > { %v1490_v4 = vsel %vm595_vm3, %v1485_v9, 0.0 }
 0xd02   : > { %1491 = vadd.xlane.f32.xlu1 %v1490_v4 }
 0xd8f   : > { %v1492_v11 = vpop.xlane.xlu1 %1491 }
 0xd90   : > { %v1493_v12 = vmul.f32 0.03125, %v1492_v11 }
 0xd92   : > { %v1494_v13 = vsub.f32 %v1485_v9, %v1493_v12 }
 0xd94   : > { %v1495_v14 = vmul.f32 %v1494_v13, %v1494_v13 }
 0xd96   : > { %v1496_v15 = vsel %vm595_vm3, %v1495_v14, 0.0 }
 0xd97   : > { %1497 = vadd.xlane.f32.xlu0 %v1496_v15 }
 0xe24   : > { %v1498_v16 = vpop.xlane.xlu0 %1497 }
 0xe25   : > { %v1499_v17 = vmul.f32 0.03125, %v1498_v16 }
 0xe27   : > { %v1500_v18 = vadd.f32 1e-05, %v1499_v17 }
 0xe29   : > { %2010 = vrsqrt.f32 %v1500_v18 }
 0xe33   : > { %v2011_v19 = vpop.eup %2010 }
 0xe34   : > { %v1502_v21 = vmul.f32 %v2011_v19, %v1494_v13 }
 0xe36   : > { %v1509_v6 = vmul.f32 %v1812_v20, %v1502_v21 }
 0xe38   : > { %v1516_v25 = vadd.f32 %v1813_v22, %v1509_v6 }
 0xe3a   : > { %v1525_v26 = vmul.f32 %v1815_v23, %v1516_v25 }
 0xe3c   : > { %v1526_v28 = vsel %vm595_vm3, %v1525_v26, 0.0 }
 0xe3d   : > { %1527 = vadd.xlane.f32.xlu1 %v1526_v28 }
 0xe4e   : > { %1544 = vrot.lane.b32.xlu1 %v2352_v27, %s2043_s2 }
 0xeca   : > { %v1528_v31 = vpop.xlane.xlu1 %1527 }
 0xecb   : > { %v1537_v32 = vadd.f32 %v1817_v29, %v1528_v31 }
 0xecd   : > { %v1538_v33 = vsel %vm2343_vm6, 0.0, %v1537_v32 }
 0xece   : > { %1548 = vrot.lane.b32.xlu0 %v1538_v33, %s2044_s26  ;;  %v1539_v34 = vmul.f32 1.442695, %v1538_v33  ;;  %v1545_v27 = vpop.permute.xlu1 %1544 }
 0xecf   : > { %v1556_v24 = vsel %vm1555_vm13, %v2357_v30, %v1545_v27 }
 0xed0   : > { %2012 = vpow2.f32 %v1539_v34 }
 0xeda   : > { %v2013_v35 = vpop.eup %2012 }
 0xedb   : > { %v1818_v36 = vadd.f32 -1.0, %v2013_v35 }
 0xedd   : > { %v1947_v37 = vround.rtne.f32 %v1818_v36 }
 0xedf   : > { %v1543_v38 = vmax.f32 %v1947_v37, 0.0 }
 0xee1   : > { %1552 = vrot.lane.b32.xlu1 %v1543_v38, %s2045_s27 }
 0xf40   : > { %v1549_v39 = vpop.permute.xlu0 %1548 }
 0xf41   : > { %v1558_v40 = vsel %vm1557_vm14, %v1556_v24, %v1549_v39 }
 0xf53   : > { %v1553_v41 = vpop.permute.xlu1 %1552 }
 0xf54   : > { %v1560_v42 = vsel %vm1559_vm15, %v1558_v40, %v1553_v41 }
 0xf55   : > { %1561 = vxpose.xlu1.b32.start.end [1/1] (short) (narrow) %v1560_v42, 8 }
 0xfd5   : > { %v1577_v43 = vpop.trf.xlu1 }
 0xfd6   : > { %1594 = vst.msk [vmem:[%s566_s29] sm:$0xf] %vm1593_vm0, %v1577_v43  ;;  %v1596_v44 = vsel %vm1595_vm1, %v1577_v43, 0.0 }
 0xfd7   : > { %1597 = vadd.xlane.f32.xlu0 %v1596_v44 }
0x1064   : > { %v1598_v30 = vpop.xlane.xlu0 %1597 }
0x1065   : > { %1600 = vst.msk [vmem:[%s569_s5 - $0x3] sm:$0x8] %vm1599_vm2, %v1598_v30 }
0x1066 PF: > { %s35_s19 = sadd.s32 1, %s2034_s19  }
0x1067   : > { %p32_p9 = scmp.ge.s32.totalorder %s35_s19, 4  }
0x1069   :  { %34 = sbr.rel (!%p32_p9) target bundleno = 23 (0x17), region = 150 }

</bundles_post_ra>
